<compile_context>
chip_gen: v6e
topology: v6e:2x2x1
jax: 0.10.0
libtpu: 0.0.40
codegen_flags: <defaults>
</compile_context>

<pallas_src>
import math

import jax
import jax.numpy as jnp
from jax.experimental import pallas as pl
from jax.experimental.pallas import tpu as pltpu


def _round_up(n, m):
    return ((n + m - 1) // m) * m


# ------------------------------ fused kernel ---------------------------------
def _make_decoder_kernel(T, B, H, O_pad, L):
    """Build the fused GRU(L layers) + Linear kernel for static shapes.

    Ref layout (all full-array VMEM blocks, time-major):
      x (T*B, D), h0 (L, B, H),
      per layer: w_ih_t (D_in, 3H), w_hh_t (H, 3H), b_g (1, 3H), b_hn (1, H),
      w_out_t (H, O_pad), b_out (1, O_pad)
      outputs: out (T*B, O_pad), hT (L, B, H)   [hT aliases h0 in HBM]
      scratch: seq (T*B, H) f32 VMEM
    """

    def kernel(*refs):
        x_ref, h0_ref = refs[0], refs[1]
        idx = 2
        layers = []
        for _ in range(L):
            layers.append(refs[idx:idx + 4])     # (w_ih_t, w_hh_t, b_g, b_hn)
            idx += 4
        w_out_ref, b_out_ref = refs[idx], refs[idx + 1]
        out_ref, hT_ref = refs[idx + 2], refs[idx + 3]
        seq_ref = refs[idx + 4]                  # (T*B, H) f32 VMEM scratch

        # Layer-0 input: already time-major (row = t*B + b), no in-kernel
        # permute needed.
        cur = x_ref[...].astype(jnp.float32)                       # (T*B, D)

        for l in range(L):
            w_ih_ref, w_hh_ref, b_g_ref, b_hn_ref = layers[l]

            # Batched input projection for ALL timesteps (off the serial
            # chain).  b_g = b_ih + [b_hh_r, b_hh_z, 0] already folded in.
            # At production sizes cast `cur` / weights to bf16 here (keep
            # preferred_element_type=f32 and the gate math below in f32).
            gi = (jnp.dot(cur, w_ih_ref[...],
                          preferred_element_type=jnp.float32)
                  + b_g_ref[...])                                  # (T*B, 3H)

            w_hh = w_hh_ref[...]                                   # (H, 3H)
            # Hoisted: JAX does not CSE broadcast_in_dim inside the unroll.
            b_hn = jnp.broadcast_to(b_hn_ref[...], (B, H))         # (B, H)
            h = h0_ref[l].astype(jnp.float32)                      # (B, H)

            # Small static T -> full unroll is fine; switch to
            # lax.fori_loop(..., unroll=4..8) writing into seq_ref for long T.
            for t in range(T):
                gi_t = gi[t * B:(t + 1) * B, :]                    # (B, 3H)
                gh = jnp.dot(h, w_hh, preferred_element_type=jnp.float32)
                r = jax.nn.sigmoid(gi_t[:, 0 * H:1 * H] + gh[:, 0 * H:1 * H])
                z = jax.nn.sigmoid(gi_t[:, 1 * H:2 * H] + gh[:, 1 * H:2 * H])
                n = jnp.tanh(gi_t[:, 2 * H:3 * H]
                             + r * (gh[:, 2 * H:3 * H] + b_hn))
                h = (1.0 - z) * n + z * h
                # Bounded live range: write straight into the VMEM slab.
                seq_ref[t * B:(t + 1) * B, :] = h

            hT_ref[l] = h.astype(hT_ref.dtype)                     # (B, H)
            cur = seq_ref[...]                                     # (T*B, H)

        # Final Linear on the whole sequence in one matmul; weights are
        # pre-padded to 128 output lanes -> single unmasked lane-dense store.
        y = (jnp.dot(cur, w_out_ref[...], preferred_element_type=jnp.float32)
             + b_out_ref[...])                                     # (T*B, O_pad)
        out_ref[...] = y.astype(out_ref.dtype)

    return kernel


def _full_spec(shape):
    zero = (0,) * len(shape)
    return pl.BlockSpec(shape, lambda i, z=zero: z)


# --------------------------- parameter preparation ---------------------------
def init_params(key, output_size, hidden_size, num_layers):
    """PyTorch-layout synthetic parameters (same init range as nn.GRU/Linear)."""
    scale = 1.0 / math.sqrt(hidden_size)
    params = {"output_size": output_size, "hidden_size": hidden_size,
              "num_layers": num_layers, "gru": []}
    for layer in range(num_layers):
        d_in = output_size if layer == 0 else hidden_size
        key, k1, k2, k3, k4 = jax.random.split(key, 5)
        params["gru"].append({
            "w_ih": jax.random.uniform(k1, (3 * hidden_size, d_in),
                                       jnp.float32, -scale, scale),
            "w_hh": jax.random.uniform(k2, (3 * hidden_size, hidden_size),
                                       jnp.float32, -scale, scale),
            "b_ih": jax.random.uniform(k3, (3 * hidden_size,),
                                       jnp.float32, -scale, scale),
            "b_hh": jax.random.uniform(k4, (3 * hidden_size,),
                                       jnp.float32, -scale, scale),
        })
    key, k1, k2 = jax.random.split(key, 3)
    params["out"] = {
        "w": jax.random.uniform(k1, (output_size, hidden_size),
                                jnp.float32, -scale, scale),
        "b": jax.random.uniform(k2, (output_size,), jnp.float32, -scale, scale),
    }
    return params


def prepare_params(params):
    """One-time (not per-call) weight transposition, bias folding, lane padding."""
    H = params["hidden_size"]
    O = params["output_size"]
    O_pad = _round_up(O, 128)          # lane-dense output store
    prep = {"output_size": O, "hidden_size": H,
            "num_layers": params["num_layers"], "o_pad": O_pad, "layers": []}
    for p in params["gru"]:
        # Fold b_ih fully and the r/z slices of b_hh; keep b_hn separate
        # (PyTorch GRU: n = tanh(W_in x + b_in + r*(W_hn h + b_hn))).
        b_g = p["b_ih"] + jnp.concatenate(
            [p["b_hh"][:2 * H], jnp.zeros((H,), jnp.float32)])
        prep["layers"].append({
            "w_ih_t": jnp.transpose(p["w_ih"]),        # (D_in, 3H)
            "w_hh_t": jnp.transpose(p["w_hh"]),        # (H, 3H)
            "b_g": b_g.reshape(1, 3 * H),              # (1, 3H)
            "b_hn": p["b_hh"][2 * H:].reshape(1, H),   # (1, H)
        })
    w_out_t = jnp.transpose(params["out"]["w"])                     # (H, O)
    prep["w_out_t"] = jnp.pad(w_out_t, ((0, 0), (0, O_pad - O)))    # (H, O_pad)
    prep["b_out"] = jnp.pad(params["out"]["b"],
                            (0, O_pad - O)).reshape(1, O_pad)       # (1, O_pad)
    return prep


# -------------------------------- forward pass --------------------------------
def decoder_forward(prep, inp, hidden):
    """inp: (B, T, output_size) batch-first, hidden: (num_layers, B, H).

    NOTE: `hidden` is donated to the kernel (aliased to the final-hidden
    output); do not reuse it after this call.
    """
    B, T, D = inp.shape
    H = prep["hidden_size"]
    O = prep["output_size"]
    O_pad = prep["o_pad"]
    L = prep["num_layers"]

    # Batch-first -> time-major done ONCE in XLA outside the kernel (cheap
    # transpose + free row-major reshape) instead of 16 in-kernel row shuffles.
    x_tm = jnp.transpose(inp, (1, 0, 2)).reshape(T * B, D).astype(jnp.float32)
    h0 = hidden.astype(jnp.float32)

    args = [x_tm, h0]
    in_specs = [_full_spec(x_tm.shape), _full_spec(h0.shape)]
    # At production H on v7x (64 MiB VMEM): give the weight specs
    # pipeline_mode=pl.Buffered(1) (or memory_space=pl.ANY + one sync_copy)
    # so full-array weights are not double-buffered.
    for lp in prep["layers"]:
        for name in ("w_ih_t", "w_hh_t", "b_g", "b_hn"):
            a = lp[name]
            args.append(a)
            in_specs.append(_full_spec(a.shape))
    for a in (prep["w_out_t"], prep["b_out"]):
        args.append(a)
        in_specs.append(_full_spec(a.shape))

    out_tm, hT = pl.pallas_call(
        _make_decoder_kernel(T, B, H, O_pad, L),
        out_shape=(
            jax.ShapeDtypeStruct((T * B, O_pad), jnp.float32),
            jax.ShapeDtypeStruct((L, B, H), jnp.float32),
        ),
        grid_spec=pltpu.PrefetchScalarGridSpec(
            num_scalar_prefetch=0,
            # Serial recurrence: single grid step.  On v7x at production B,
            # add a leading "parallel" batch axis to use both TensorCores.
            grid=(1,),
            in_specs=in_specs,
            out_specs=[_full_spec((T * B, O_pad)), _full_spec((L, B, H))],
            scratch_shapes=[pltpu.VMEM((T * B, H), jnp.float32)],
        ),
        compiler_params=pltpu.CompilerParams(
            dimension_semantics=("arbitrary",),
            vmem_limit_bytes=32 * 1024 * 1024),
        # P8: final hidden written in place over the initial hidden buffer.
        input_output_aliases={1: 1},
    )(*args)

    # Strip lane padding and go time-major -> batch-first in XLA.
    out = out_tm[:, :O].reshape(T, B, O).transpose(1, 0, 2)
    return out, hT


# ---------------------------- pure-JAX reference -------------------------------
def decoder_forward_ref(params, inp, hidden):
    H = params["hidden_size"]
    x = inp.astype(jnp.float32)
    finals = []
    for layer in range(params["num_layers"]):
        p = params["gru"][layer]

        def step(h, xt, p=p):
            gi = xt @ p["w_ih"].T + p["b_ih"]
            gh = h @ p["w_hh"].T + p["b_hh"]
            r = jax.nn.sigmoid(gi[:, :H] + gh[:, :H])
            z = jax.nn.sigmoid(gi[:, H:2 * H] + gh[:, H:2 * H])
            n = jnp.tanh(gi[:, 2 * H:] + r * gh[:, 2 * H:])
            h_new = (1.0 - z) * n + z * h
            return h_new, h_new

        hT, ys = jax.lax.scan(step, hidden[layer], jnp.transpose(x, (1, 0, 2)))
        x = jnp.transpose(ys, (1, 0, 2))
        finals.append(hT)
    out = x @ params["out"]["w"].T + params["out"]["b"]
    return out, jnp.stack(finals, axis=0)


# ------------------------------------ main -------------------------------------
if __name__ == "__main__":
    output_size, hidden_size, num_layers = 16, 32, 2
    B, T = 2, 8

    key = jax.random.PRNGKey(0)
    kp, kx, kh = jax.random.split(key, 3)
    params = init_params(kp, output_size, hidden_size, num_layers)
    prep = prepare_params(params)          # one-time weight prep, not per call

    x = jax.random.normal(kx, (B, T, output_size), jnp.float32)
    h0 = jax.random.normal(kh, (num_layers, B, hidden_size), jnp.float32)

    # Compute the reference BEFORE the kernel call: h0 is donated to the
    # kernel (input_output_aliases) and must not be read afterwards.
    out_ref, hid_ref = decoder_forward_ref(params, x, h0)
    out_ref, hid_ref = jax.block_until_ready((out_ref, hid_ref))

    out, hid = decoder_forward(prep, x, h0)
    out, hid = jax.block_until_ready((out, hid))

    assert out.shape == (B, T, output_size)
    assert hid.shape == (num_layers, B, hidden_size)
    assert jnp.allclose(out, out_ref, atol=1e-4), "GRU/Linear output mismatch"
    assert jnp.allclose(hid, hid_ref, atol=1e-4), "final hidden mismatch"

    print("KERNEL_OK")
</pallas_src>

<mosaic_0001>
module attributes {stable_mosaic.version = 11 : i64} {
  func.func @kernel(%arg0: i32, %arg1: memref<16x16xf32, #tpu.memory_space<vmem>>, %arg2: memref<2x2x32xf32, #tpu.memory_space<vmem>>, %arg3: memref<16x96xf32, #tpu.memory_space<vmem>>, %arg4: memref<32x96xf32, #tpu.memory_space<vmem>>, %arg5: memref<1x96xf32, #tpu.memory_space<vmem>>, %arg6: memref<1x32xf32, #tpu.memory_space<vmem>>, %arg7: memref<32x96xf32, #tpu.memory_space<vmem>>, %arg8: memref<32x96xf32, #tpu.memory_space<vmem>>, %arg9: memref<1x96xf32, #tpu.memory_space<vmem>>, %arg10: memref<1x32xf32, #tpu.memory_space<vmem>>, %arg11: memref<32x128xf32, #tpu.memory_space<vmem>>, %arg12: memref<1x128xf32, #tpu.memory_space<vmem>>, %arg13: memref<16x128xf32, #tpu.memory_space<vmem>>, %arg14: memref<2x2x32xf32, #tpu.memory_space<vmem>>, %arg15: memref<16x32xf32, #tpu.memory_space<vmem>>) attributes {dimension_semantics = [#tpu.dimension_semantics<arbitrary>], iteration_bounds = array<i64: 1>, scalar_prefetch = 0 : i64, scratch_operands = 1 : i64, tpu.core_type = #tpu.core_type<tc>, window_params = [{pipeline_mode = #tpu.pipeline_mode<synchronous>, transform_indices = @transform_0, window_bounds = array<i64: 16, 16>}, {pipeline_mode = #tpu.pipeline_mode<synchronous>, transform_indices = @transform_1, window_bounds = array<i64: 2, 2, 32>}, {pipeline_mode = #tpu.pipeline_mode<synchronous>, transform_indices = @transform_2, window_bounds = array<i64: 16, 96>}, {pipeline_mode = #tpu.pipeline_mode<synchronous>, transform_indices = @transform_3, window_bounds = array<i64: 32, 96>}, {pipeline_mode = #tpu.pipeline_mode<synchronous>, transform_indices = @transform_4, window_bounds = array<i64: 1, 96>}, {pipeline_mode = #tpu.pipeline_mode<synchronous>, transform_indices = @transform_5, window_bounds = array<i64: 1, 32>}, {pipeline_mode = #tpu.pipeline_mode<synchronous>, transform_indices = @transform_6, window_bounds = array<i64: 32, 96>}, {pipeline_mode = #tpu.pipeline_mode<synchronous>, transform_indices = @transform_7, window_bounds = array<i64: 32, 96>}, {pipeline_mode = #tpu.pipeline_mode<synchronous>, transform_indices = @transform_8, window_bounds = array<i64: 1, 96>}, {pipeline_mode = #tpu.pipeline_mode<synchronous>, transform_indices = @transform_9, window_bounds = array<i64: 1, 32>}, {pipeline_mode = #tpu.pipeline_mode<synchronous>, transform_indices = @transform_10, window_bounds = array<i64: 32, 128>}, {pipeline_mode = #tpu.pipeline_mode<synchronous>, transform_indices = @transform_11, window_bounds = array<i64: 1, 128>}, {pipeline_mode = #tpu.pipeline_mode<synchronous>, transform_indices = @transform_12, window_bounds = array<i64: 16, 128>}, {pipeline_mode = #tpu.pipeline_mode<synchronous>, transform_indices = @transform_13, window_bounds = array<i64: 2, 2, 32>}]} {
    %c0 = arith.constant 0 : index
    %c0_0 = arith.constant 0 : index
    %0 = vector.load %arg1[%c0, %c0_0] : memref<16x16xf32, #tpu.memory_space<vmem>>, vector<16x16xf32>
    %c0_1 = arith.constant 0 : index
    %c0_2 = arith.constant 0 : index
    %1 = vector.load %arg3[%c0_1, %c0_2] : memref<16x96xf32, #tpu.memory_space<vmem>>, vector<16x96xf32>
    %cst = arith.constant dense<0.000000e+00> : vector<16x96xf32>
    %2 = tpu.matmul %0, %1, %cst {dimension_numbers = #tpu.dot_dimension_numbers<[1], [0], [0], [1], [0, 0, 1, 1], [], []>} : vector<16x16xf32>, vector<16x96xf32>, vector<16x96xf32> -> vector<16x96xf32>
    %c0_3 = arith.constant 0 : index
    %c0_4 = arith.constant 0 : index
    %3 = vector.load %arg5[%c0_3, %c0_4] : memref<1x96xf32, #tpu.memory_space<vmem>>, vector<1x96xf32>
    %4 = vector.broadcast %3 : vector<1x96xf32> to vector<16x96xf32>
    %5 = arith.addf %2, %4 : vector<16x96xf32>
    %c0_5 = arith.constant 0 : index
    %c0_6 = arith.constant 0 : index
    %6 = vector.load %arg4[%c0_5, %c0_6] : memref<32x96xf32, #tpu.memory_space<vmem>>, vector<32x96xf32>
    %c0_7 = arith.constant 0 : index
    %c0_8 = arith.constant 0 : index
    %7 = vector.load %arg6[%c0_7, %c0_8] : memref<1x32xf32, #tpu.memory_space<vmem>>, vector<1x32xf32>
    %8 = vector.shape_cast %7 : vector<1x32xf32> to vector<1x32xf32>
    %9 = vector.broadcast %8 : vector<1x32xf32> to vector<2x32xf32>
    %c0_9 = arith.constant 0 : index
    %c0_10 = arith.constant 0 : index
    %c0_11 = arith.constant 0 : index
    %10 = vector.load %arg2[%c0_9, %c0_10, %c0_11] : memref<2x2x32xf32, #tpu.memory_space<vmem>>, vector<1x2x32xf32>
    %11 = vector.shape_cast %10 : vector<1x2x32xf32> to vector<2x32xf32>
    %12 = vector.extract_strided_slice %5 {offsets = [0, 0], sizes = [2, 96], strides = [1, 1]} : vector<16x96xf32> to vector<2x96xf32>
    %cst_12 = arith.constant dense<0.000000e+00> : vector<2x96xf32>
    %13 = tpu.matmul %11, %6, %cst_12 {dimension_numbers = #tpu.dot_dimension_numbers<[1], [0], [0], [1], [0, 0, 1, 1], [], []>} : vector<2x32xf32>, vector<32x96xf32>, vector<2x96xf32> -> vector<2x96xf32>
    %14 = vector.extract_strided_slice %12 {offsets = [0, 0], sizes = [2, 32], strides = [1, 1]} : vector<2x96xf32> to vector<2x32xf32>
    %15 = vector.extract_strided_slice %13 {offsets = [0, 0], sizes = [2, 32], strides = [1, 1]} : vector<2x96xf32> to vector<2x32xf32>
    %16 = arith.addf %14, %15 : vector<2x32xf32>
    %17 = arith.negf %16 : vector<2x32xf32>
    %18 = math.exp %17 : vector<2x32xf32>
    %cst_13 = arith.constant 1.000000e+00 : f32
    %19 = vector.broadcast %cst_13 : f32 to vector<2x32xf32>
    %20 = arith.addf %19, %18 : vector<2x32xf32>
    %21 = arith.divf %19, %20 : vector<2x32xf32>
    %22 = vector.extract_strided_slice %12 {offsets = [0, 32], sizes = [2, 32], strides = [1, 1]} : vector<2x96xf32> to vector<2x32xf32>
    %23 = vector.extract_strided_slice %13 {offsets = [0, 32], sizes = [2, 32], strides = [1, 1]} : vector<2x96xf32> to vector<2x32xf32>
    %24 = arith.addf %22, %23 : vector<2x32xf32>
    %25 = arith.negf %24 : vector<2x32xf32>
    %26 = math.exp %25 : vector<2x32xf32>
    %cst_14 = arith.constant 1.000000e+00 : f32
    %27 = vector.broadcast %cst_14 : f32 to vector<2x32xf32>
    %28 = arith.addf %27, %26 : vector<2x32xf32>
    %29 = arith.divf %27, %28 : vector<2x32xf32>
    %30 = vector.extract_strided_slice %12 {offsets = [0, 64], sizes = [2, 32], strides = [1, 1]} : vector<2x96xf32> to vector<2x32xf32>
    %31 = vector.extract_strided_slice %13 {offsets = [0, 64], sizes = [2, 32], strides = [1, 1]} : vector<2x96xf32> to vector<2x32xf32>
    %32 = arith.addf %31, %9 : vector<2x32xf32>
    %33 = arith.mulf %21, %32 : vector<2x32xf32>
    %34 = arith.addf %30, %33 : vector<2x32xf32>
    %35 = math.tanh %34 : vector<2x32xf32>
    %cst_15 = arith.constant 1.000000e+00 : f32
    %36 = vector.broadcast %cst_15 : f32 to vector<2x32xf32>
    %37 = arith.subf %36, %29 : vector<2x32xf32>
    %38 = arith.mulf %37, %35 : vector<2x32xf32>
    %39 = arith.mulf %29, %11 : vector<2x32xf32>
    %40 = arith.addf %38, %39 : vector<2x32xf32>
    %c0_16 = arith.constant 0 : index
    %c0_17 = arith.constant 0 : index
    %41 = vector.load %arg15[%c0_16, %c0_17] : memref<16x32xf32, #tpu.memory_space<vmem>>, vector<2x32xf32>
    tpu.vector_store %arg15[%c0_16, %c0_17], %40 {strides = array<i32>} : memref<16x32xf32, #tpu.memory_space<vmem>>, vector<2x32xf32>,
    %42 = vector.extract_strided_slice %5 {offsets = [2, 0], sizes = [2, 96], strides = [1, 1]} : vector<16x96xf32> to vector<2x96xf32>
    %cst_18 = arith.constant dense<0.000000e+00> : vector<2x96xf32>
    %43 = tpu.matmul %40, %6, %cst_18 {dimension_numbers = #tpu.dot_dimension_numbers<[1], [0], [0], [1], [0, 0, 1, 1], [], []>} : vector<2x32xf32>, vector<32x96xf32>, vector<2x96xf32> -> vector<2x96xf32>
    %44 = vector.extract_strided_slice %42 {offsets = [0, 0], sizes = [2, 32], strides = [1, 1]} : vector<2x96xf32> to vector<2x32xf32>
    %45 = vector.extract_strided_slice %43 {offsets = [0, 0], sizes = [2, 32], strides = [1, 1]} : vector<2x96xf32> to vector<2x32xf32>
    %46 = arith.addf %44, %45 : vector<2x32xf32>
    %47 = arith.negf %46 : vector<2x32xf32>
    %48 = math.exp %47 : vector<2x32xf32>
    %cst_19 = arith.constant 1.000000e+00 : f32
    %49 = vector.broadcast %cst_19 : f32 to vector<2x32xf32>
    %50 = arith.addf %49, %48 : vector<2x32xf32>
    %51 = arith.divf %49, %50 : vector<2x32xf32>
    %52 = vector.extract_strided_slice %42 {offsets = [0, 32], sizes = [2, 32], strides = [1, 1]} : vector<2x96xf32> to vector<2x32xf32>
    %53 = vector.extract_strided_slice %43 {offsets = [0, 32], sizes = [2, 32], strides = [1, 1]} : vector<2x96xf32> to vector<2x32xf32>
    %54 = arith.addf %52, %53 : vector<2x32xf32>
    %55 = arith.negf %54 : vector<2x32xf32>
    %56 = math.exp %55 : vector<2x32xf32>
    %cst_20 = arith.constant 1.000000e+00 : f32
    %57 = vector.broadcast %cst_20 : f32 to vector<2x32xf32>
    %58 = arith.addf %57, %56 : vector<2x32xf32>
    %59 = arith.divf %57, %58 : vector<2x32xf32>
    %60 = vector.extract_strided_slice %42 {offsets = [0, 64], sizes = [2, 32], strides = [1, 1]} : vector<2x96xf32> to vector<2x32xf32>
    %61 = vector.extract_strided_slice %43 {offsets = [0, 64], sizes = [2, 32], strides = [1, 1]} : vector<2x96xf32> to vector<2x32xf32>
    %62 = arith.addf %61, %9 : vector<2x32xf32>
    %63 = arith.mulf %51, %62 : vector<2x32xf32>
    %64 = arith.addf %60, %63 : vector<2x32xf32>
    %65 = math.tanh %64 : vector<2x32xf32>
    %cst_21 = arith.constant 1.000000e+00 : f32
    %66 = vector.broadcast %cst_21 : f32 to vector<2x32xf32>
    %67 = arith.subf %66, %59 : vector<2x32xf32>
    %68 = arith.mulf %67, %65 : vector<2x32xf32>
    %69 = arith.mulf %59, %40 : vector<2x32xf32>
    %70 = arith.addf %68, %69 : vector<2x32xf32>
    %c2 = arith.constant 2 : index
    %c0_22 = arith.constant 0 : index
    %71 = vector.load %arg15[%c2, %c0_22] : memref<16x32xf32, #tpu.memory_space<vmem>>, vector<2x32xf32>
    tpu.vector_store %arg15[%c2, %c0_22], %70 {strides = array<i32>} : memref<16x32xf32, #tpu.memory_space<vmem>>, vector<2x32xf32>,
    %72 = vector.extract_strided_slice %5 {offsets = [4, 0], sizes = [2, 96], strides = [1, 1]} : vector<16x96xf32> to vector<2x96xf32>
    %cst_23 = arith.constant dense<0.000000e+00> : vector<2x96xf32>
    %73 = tpu.matmul %70, %6, %cst_23 {dimension_numbers = #tpu.dot_dimension_numbers<[1], [0], [0], [1], [0, 0, 1, 1], [], []>} : vector<2x32xf32>, vector<32x96xf32>, vector<2x96xf32> -> vector<2x96xf32>
    %74 = vector.extract_strided_slice %72 {offsets = [0, 0], sizes = [2, 32], strides = [1, 1]} : vector<2x96xf32> to vector<2x32xf32>
    %75 = vector.extract_strided_slice %73 {offsets = [0, 0], sizes = [2, 32], strides = [1, 1]} : vector<2x96xf32> to vector<2x32xf32>
    %76 = arith.addf %74, %75 : vector<2x32xf32>
    %77 = arith.negf %76 : vector<2x32xf32>
    %78 = math.exp %77 : vector<2x32xf32>
    %cst_24 = arith.constant 1.000000e+00 : f32
    %79 = vector.broadcast %cst_24 : f32 to vector<2x32xf32>
    %80 = arith.addf %79, %78 : vector<2x32xf32>
    %81 = arith.divf %79, %80 : vector<2x32xf32>
    %82 = vector.extract_strided_slice %72 {offsets = [0, 32], sizes = [2, 32], strides = [1, 1]} : vector<2x96xf32> to vector<2x32xf32>
    %83 = vector.extract_strided_slice %73 {offsets = [0, 32], sizes = [2, 32], strides = [1, 1]} : vector<2x96xf32> to vector<2x32xf32>
    %84 = arith.addf %82, %83 : vector<2x32xf32>
    %85 = arith.negf %84 : vector<2x32xf32>
    %86 = math.exp %85 : vector<2x32xf32>
    %cst_25 = arith.constant 1.000000e+00 : f32
    %87 = vector.broadcast %cst_25 : f32 to vector<2x32xf32>
    %88 = arith.addf %87, %86 : vector<2x32xf32>
    %89 = arith.divf %87, %88 : vector<2x32xf32>
    %90 = vector.extract_strided_slice %72 {offsets = [0, 64], sizes = [2, 32], strides = [1, 1]} : vector<2x96xf32> to vector<2x32xf32>
    %91 = vector.extract_strided_slice %73 {offsets = [0, 64], sizes = [2, 32], strides = [1, 1]} : vector<2x96xf32> to vector<2x32xf32>
    %92 = arith.addf %91, %9 : vector<2x32xf32>
    %93 = arith.mulf %81, %92 : vector<2x32xf32>
    %94 = arith.addf %90, %93 : vector<2x32xf32>
    %95 = math.tanh %94 : vector<2x32xf32>
    %cst_26 = arith.constant 1.000000e+00 : f32
    %96 = vector.broadcast %cst_26 : f32 to vector<2x32xf32>
    %97 = arith.subf %96, %89 : vector<2x32xf32>
    %98 = arith.mulf %97, %95 : vector<2x32xf32>
    %99 = arith.mulf %89, %70 : vector<2x32xf32>
    %100 = arith.addf %98, %99 : vector<2x32xf32>
    %c4 = arith.constant 4 : index
    %c0_27 = arith.constant 0 : index
    %101 = vector.load %arg15[%c4, %c0_27] : memref<16x32xf32, #tpu.memory_space<vmem>>, vector<2x32xf32>
    tpu.vector_store %arg15[%c4, %c0_27], %100 {strides = array<i32>} : memref<16x32xf32, #tpu.memory_space<vmem>>, vector<2x32xf32>,
    %102 = vector.extract_strided_slice %5 {offsets = [6, 0], sizes = [2, 96], strides = [1, 1]} : vector<16x96xf32> to vector<2x96xf32>
    %cst_28 = arith.constant dense<0.000000e+00> : vector<2x96xf32>
    %103 = tpu.matmul %100, %6, %cst_28 {dimension_numbers = #tpu.dot_dimension_numbers<[1], [0], [0], [1], [0, 0, 1, 1], [], []>} : vector<2x32xf32>, vector<32x96xf32>, vector<2x96xf32> -> vector<2x96xf32>
    %104 = vector.extract_strided_slice %102 {offsets = [0, 0], sizes = [2, 32], strides = [1, 1]} : vector<2x96xf32> to vector<2x32xf32>
    %105 = vector.extract_strided_slice %103 {offsets = [0, 0], sizes = [2, 32], strides = [1, 1]} : vector<2x96xf32> to vector<2x32xf32>
    %106 = arith.addf %104, %105 : vector<2x32xf32>
    %107 = arith.negf %106 : vector<2x32xf32>
    %108 = math.exp %107 : vector<2x32xf32>
    %cst_29 = arith.constant 1.000000e+00 : f32
    %109 = vector.broadcast %cst_29 : f32 to vector<2x32xf32>
    %110 = arith.addf %109, %108 : vector<2x32xf32>
    %111 = arith.divf %109, %110 : vector<2x32xf32>
    %112 = vector.extract_strided_slice %102 {offsets = [0, 32], sizes = [2, 32], strides = [1, 1]} : vector<2x96xf32> to vector<2x32xf32>
    %113 = vector.extract_strided_slice %103 {offsets = [0, 32], sizes = [2, 32], strides = [1, 1]} : vector<2x96xf32> to vector<2x32xf32>
    %114 = arith.addf %112, %113 : vector<2x32xf32>
    %115 = arith.negf %114 : vector<2x32xf32>
    %116 = math.exp %115 : vector<2x32xf32>
    %cst_30 = arith.constant 1.000000e+00 : f32
    %117 = vector.broadcast %cst_30 : f32 to vector<2x32xf32>
    %118 = arith.addf %117, %116 : vector<2x32xf32>
    %119 = arith.divf %117, %118 : vector<2x32xf32>
    %120 = vector.extract_strided_slice %102 {offsets = [0, 64], sizes = [2, 32], strides = [1, 1]} : vector<2x96xf32> to vector<2x32xf32>
    %121 = vector.extract_strided_slice %103 {offsets = [0, 64], sizes = [2, 32], strides = [1, 1]} : vector<2x96xf32> to vector<2x32xf32>
    %122 = arith.addf %121, %9 : vector<2x32xf32>
    %123 = arith.mulf %111, %122 : vector<2x32xf32>
    %124 = arith.addf %120, %123 : vector<2x32xf32>
    %125 = math.tanh %124 : vector<2x32xf32>
    %cst_31 = arith.constant 1.000000e+00 : f32
    %126 = vector.broadcast %cst_31 : f32 to vector<2x32xf32>
    %127 = arith.subf %126, %119 : vector<2x32xf32>
    %128 = arith.mulf %127, %125 : vector<2x32xf32>
    %129 = arith.mulf %119, %100 : vector<2x32xf32>
    %130 = arith.addf %128, %129 : vector<2x32xf32>
    %c6 = arith.constant 6 : index
    %c0_32 = arith.constant 0 : index
    %131 = vector.load %arg15[%c6, %c0_32] : memref<16x32xf32, #tpu.memory_space<vmem>>, vector<2x32xf32>
    tpu.vector_store %arg15[%c6, %c0_32], %130 {strides = array<i32>} : memref<16x32xf32, #tpu.memory_space<vmem>>, vector<2x32xf32>,
    %132 = vector.extract_strided_slice %5 {offsets = [8, 0], sizes = [2, 96], strides = [1, 1]} : vector<16x96xf32> to vector<2x96xf32>
    %cst_33 = arith.constant dense<0.000000e+00> : vector<2x96xf32>
    %133 = tpu.matmul %130, %6, %cst_33 {dimension_numbers = #tpu.dot_dimension_numbers<[1], [0], [0], [1], [0, 0, 1, 1], [], []>} : vector<2x32xf32>, vector<32x96xf32>, vector<2x96xf32> -> vector<2x96xf32>
    %134 = vector.extract_strided_slice %132 {offsets = [0, 0], sizes = [2, 32], strides = [1, 1]} : vector<2x96xf32> to vector<2x32xf32>
    %135 = vector.extract_strided_slice %133 {offsets = [0, 0], sizes = [2, 32], strides = [1, 1]} : vector<2x96xf32> to vector<2x32xf32>
    %136 = arith.addf %134, %135 : vector<2x32xf32>
    %137 = arith.negf %136 : vector<2x32xf32>
    %138 = math.exp %137 : vector<2x32xf32>
    %cst_34 = arith.constant 1.000000e+00 : f32
    %139 = vector.broadcast %cst_34 : f32 to vector<2x32xf32>
    %140 = arith.addf %139, %138 : vector<2x32xf32>
    %141 = arith.divf %139, %140 : vector<2x32xf32>
    %142 = vector.extract_strided_slice %132 {offsets = [0, 32], sizes = [2, 32], strides = [1, 1]} : vector<2x96xf32> to vector<2x32xf32>
    %143 = vector.extract_strided_slice %133 {offsets = [0, 32], sizes = [2, 32], strides = [1, 1]} : vector<2x96xf32> to vector<2x32xf32>
    %144 = arith.addf %142, %143 : vector<2x32xf32>
    %145 = arith.negf %144 : vector<2x32xf32>
    %146 = math.exp %145 : vector<2x32xf32>
    %cst_35 = arith.constant 1.000000e+00 : f32
    %147 = vector.broadcast %cst_35 : f32 to vector<2x32xf32>
    %148 = arith.addf %147, %146 : vector<2x32xf32>
    %149 = arith.divf %147, %148 : vector<2x32xf32>
    %150 = vector.extract_strided_slice %132 {offsets = [0, 64], sizes = [2, 32], strides = [1, 1]} : vector<2x96xf32> to vector<2x32xf32>
    %151 = vector.extract_strided_slice %133 {offsets = [0, 64], sizes = [2, 32], strides = [1, 1]} : vector<2x96xf32> to vector<2x32xf32>
    %152 = arith.addf %151, %9 : vector<2x32xf32>
    %153 = arith.mulf %141, %152 : vector<2x32xf32>
    %154 = arith.addf %150, %153 : vector<2x32xf32>
    %155 = math.tanh %154 : vector<2x32xf32>
    %cst_36 = arith.constant 1.000000e+00 : f32
    %156 = vector.broadcast %cst_36 : f32 to vector<2x32xf32>
    %157 = arith.subf %156, %149 : vector<2x32xf32>
    %158 = arith.mulf %157, %155 : vector<2x32xf32>
    %159 = arith.mulf %149, %130 : vector<2x32xf32>
    %160 = arith.addf %158, %159 : vector<2x32xf32>
    %c8 = arith.constant 8 : index
    %c0_37 = arith.constant 0 : index
    %161 = vector.load %arg15[%c8, %c0_37] : memref<16x32xf32, #tpu.memory_space<vmem>>, vector<2x32xf32>
    tpu.vector_store %arg15[%c8, %c0_37], %160 {strides = array<i32>} : memref<16x32xf32, #tpu.memory_space<vmem>>, vector<2x32xf32>,
    %162 = vector.extract_strided_slice %5 {offsets = [10, 0], sizes = [2, 96], strides = [1, 1]} : vector<16x96xf32> to vector<2x96xf32>
    %cst_38 = arith.constant dense<0.000000e+00> : vector<2x96xf32>
    %163 = tpu.matmul %160, %6, %cst_38 {dimension_numbers = #tpu.dot_dimension_numbers<[1], [0], [0], [1], [0, 0, 1, 1], [], []>} : vector<2x32xf32>, vector<32x96xf32>, vector<2x96xf32> -> vector<2x96xf32>
    %164 = vector.extract_strided_slice %162 {offsets = [0, 0], sizes = [2, 32], strides = [1, 1]} : vector<2x96xf32> to vector<2x32xf32>
    %165 = vector.extract_strided_slice %163 {offsets = [0, 0], sizes = [2, 32], strides = [1, 1]} : vector<2x96xf32> to vector<2x32xf32>
    %166 = arith.addf %164, %165 : vector<2x32xf32>
    %167 = arith.negf %166 : vector<2x32xf32>
    %168 = math.exp %167 : vector<2x32xf32>
    %cst_39 = arith.constant 1.000000e+00 : f32
    %169 = vector.broadcast %cst_39 : f32 to vector<2x32xf32>
    %170 = arith.addf %169, %168 : vector<2x32xf32>
    %171 = arith.divf %169, %170 : vector<2x32xf32>
    %172 = vector.extract_strided_slice %162 {offsets = [0, 32], sizes = [2, 32], strides = [1, 1]} : vector<2x96xf32> to vector<2x32xf32>
    %173 = vector.extract_strided_slice %163 {offsets = [0, 32], sizes = [2, 32], strides = [1, 1]} : vector<2x96xf32> to vector<2x32xf32>
    %174 = arith.addf %172, %173 : vector<2x32xf32>
    %175 = arith.negf %174 : vector<2x32xf32>
    %176 = math.exp %175 : vector<2x32xf32>
    %cst_40 = arith.constant 1.000000e+00 : f32
    %177 = vector.broadcast %cst_40 : f32 to vector<2x32xf32>
    %178 = arith.addf %177, %176 : vector<2x32xf32>
    %179 = arith.divf %177, %178 : vector<2x32xf32>
    %180 = vector.extract_strided_slice %162 {offsets = [0, 64], sizes = [2, 32], strides = [1, 1]} : vector<2x96xf32> to vector<2x32xf32>
    %181 = vector.extract_strided_slice %163 {offsets = [0, 64], sizes = [2, 32], strides = [1, 1]} : vector<2x96xf32> to vector<2x32xf32>
    %182 = arith.addf %181, %9 : vector<2x32xf32>
    %183 = arith.mulf %171, %182 : vector<2x32xf32>
    %184 = arith.addf %180, %183 : vector<2x32xf32>
    %185 = math.tanh %184 : vector<2x32xf32>
    %cst_41 = arith.constant 1.000000e+00 : f32
    %186 = vector.broadcast %cst_41 : f32 to vector<2x32xf32>
    %187 = arith.subf %186, %179 : vector<2x32xf32>
    %188 = arith.mulf %187, %185 : vector<2x32xf32>
    %189 = arith.mulf %179, %160 : vector<2x32xf32>
    %190 = arith.addf %188, %189 : vector<2x32xf32>
    %c10 = arith.constant 10 : index
    %c0_42 = arith.constant 0 : index
    %191 = vector.load %arg15[%c10, %c0_42] : memref<16x32xf32, #tpu.memory_space<vmem>>, vector<2x32xf32>
    tpu.vector_store %arg15[%c10, %c0_42], %190 {strides = array<i32>} : memref<16x32xf32, #tpu.memory_space<vmem>>, vector<2x32xf32>,
    %192 = vector.extract_strided_slice %5 {offsets = [12, 0], sizes = [2, 96], strides = [1, 1]} : vector<16x96xf32> to vector<2x96xf32>
    %cst_43 = arith.constant dense<0.000000e+00> : vector<2x96xf32>
    %193 = tpu.matmul %190, %6, %cst_43 {dimension_numbers = #tpu.dot_dimension_numbers<[1], [0], [0], [1], [0, 0, 1, 1], [], []>} : vector<2x32xf32>, vector<32x96xf32>, vector<2x96xf32> -> vector<2x96xf32>
    %194 = vector.extract_strided_slice %192 {offsets = [0, 0], sizes = [2, 32], strides = [1, 1]} : vector<2x96xf32> to vector<2x32xf32>
    %195 = vector.extract_strided_slice %193 {offsets = [0, 0], sizes = [2, 32], strides = [1, 1]} : vector<2x96xf32> to vector<2x32xf32>
    %196 = arith.addf %194, %195 : vector<2x32xf32>
    %197 = arith.negf %196 : vector<2x32xf32>
    %198 = math.exp %197 : vector<2x32xf32>
    %cst_44 = arith.constant 1.000000e+00 : f32
    %199 = vector.broadcast %cst_44 : f32 to vector<2x32xf32>
    %200 = arith.addf %199, %198 : vector<2x32xf32>
    %201 = arith.divf %199, %200 : vector<2x32xf32>
    %202 = vector.extract_strided_slice %192 {offsets = [0, 32], sizes = [2, 32], strides = [1, 1]} : vector<2x96xf32> to vector<2x32xf32>
    %203 = vector.extract_strided_slice %193 {offsets = [0, 32], sizes = [2, 32], strides = [1, 1]} : vector<2x96xf32> to vector<2x32xf32>
    %204 = arith.addf %202, %203 : vector<2x32xf32>
    %205 = arith.negf %204 : vector<2x32xf32>
    %206 = math.exp %205 : vector<2x32xf32>
    %cst_45 = arith.constant 1.000000e+00 : f32
    %207 = vector.broadcast %cst_45 : f32 to vector<2x32xf32>
    %208 = arith.addf %207, %206 : vector<2x32xf32>
    %209 = arith.divf %207, %208 : vector<2x32xf32>
    %210 = vector.extract_strided_slice %192 {offsets = [0, 64], sizes = [2, 32], strides = [1, 1]} : vector<2x96xf32> to vector<2x32xf32>
    %211 = vector.extract_strided_slice %193 {offsets = [0, 64], sizes = [2, 32], strides = [1, 1]} : vector<2x96xf32> to vector<2x32xf32>
    %212 = arith.addf %211, %9 : vector<2x32xf32>
    %213 = arith.mulf %201, %212 : vector<2x32xf32>
    %214 = arith.addf %210, %213 : vector<2x32xf32>
    %215 = math.tanh %214 : vector<2x32xf32>
    %cst_46 = arith.constant 1.000000e+00 : f32
    %216 = vector.broadcast %cst_46 : f32 to vector<2x32xf32>
    %217 = arith.subf %216, %209 : vector<2x32xf32>
    %218 = arith.mulf %217, %215 : vector<2x32xf32>
    %219 = arith.mulf %209, %190 : vector<2x32xf32>
    %220 = arith.addf %218, %219 : vector<2x32xf32>
    %c12 = arith.constant 12 : index
    %c0_47 = arith.constant 0 : index
    %221 = vector.load %arg15[%c12, %c0_47] : memref<16x32xf32, #tpu.memory_space<vmem>>, vector<2x32xf32>
    tpu.vector_store %arg15[%c12, %c0_47], %220 {strides = array<i32>} : memref<16x32xf32, #tpu.memory_space<vmem>>, vector<2x32xf32>,
    %222 = vector.extract_strided_slice %5 {offsets = [14, 0], sizes = [2, 96], strides = [1, 1]} : vector<16x96xf32> to vector<2x96xf32>
    %cst_48 = arith.constant dense<0.000000e+00> : vector<2x96xf32>
    %223 = tpu.matmul %220, %6, %cst_48 {dimension_numbers = #tpu.dot_dimension_numbers<[1], [0], [0], [1], [0, 0, 1, 1], [], []>} : vector<2x32xf32>, vector<32x96xf32>, vector<2x96xf32> -> vector<2x96xf32>
    %224 = vector.extract_strided_slice %222 {offsets = [0, 0], sizes = [2, 32], strides = [1, 1]} : vector<2x96xf32> to vector<2x32xf32>
    %225 = vector.extract_strided_slice %223 {offsets = [0, 0], sizes = [2, 32], strides = [1, 1]} : vector<2x96xf32> to vector<2x32xf32>
    %226 = arith.addf %224, %225 : vector<2x32xf32>
    %227 = arith.negf %226 : vector<2x32xf32>
    %228 = math.exp %227 : vector<2x32xf32>
    %cst_49 = arith.constant 1.000000e+00 : f32
    %229 = vector.broadcast %cst_49 : f32 to vector<2x32xf32>
    %230 = arith.addf %229, %228 : vector<2x32xf32>
    %231 = arith.divf %229, %230 : vector<2x32xf32>
    %232 = vector.extract_strided_slice %222 {offsets = [0, 32], sizes = [2, 32], strides = [1, 1]} : vector<2x96xf32> to vector<2x32xf32>
    %233 = vector.extract_strided_slice %223 {offsets = [0, 32], sizes = [2, 32], strides = [1, 1]} : vector<2x96xf32> to vector<2x32xf32>
    %234 = arith.addf %232, %233 : vector<2x32xf32>
    %235 = arith.negf %234 : vector<2x32xf32>
    %236 = math.exp %235 : vector<2x32xf32>
    %cst_50 = arith.constant 1.000000e+00 : f32
    %237 = vector.broadcast %cst_50 : f32 to vector<2x32xf32>
    %238 = arith.addf %237, %236 : vector<2x32xf32>
    %239 = arith.divf %237, %238 : vector<2x32xf32>
    %240 = vector.extract_strided_slice %222 {offsets = [0, 64], sizes = [2, 32], strides = [1, 1]} : vector<2x96xf32> to vector<2x32xf32>
    %241 = vector.extract_strided_slice %223 {offsets = [0, 64], sizes = [2, 32], strides = [1, 1]} : vector<2x96xf32> to vector<2x32xf32>
    %242 = arith.addf %241, %9 : vector<2x32xf32>
    %243 = arith.mulf %231, %242 : vector<2x32xf32>
    %244 = arith.addf %240, %243 : vector<2x32xf32>
    %245 = math.tanh %244 : vector<2x32xf32>
    %cst_51 = arith.constant 1.000000e+00 : f32
    %246 = vector.broadcast %cst_51 : f32 to vector<2x32xf32>
    %247 = arith.subf %246, %239 : vector<2x32xf32>
    %248 = arith.mulf %247, %245 : vector<2x32xf32>
    %249 = arith.mulf %239, %220 : vector<2x32xf32>
    %250 = arith.addf %248, %249 : vector<2x32xf32>
    %c14 = arith.constant 14 : index
    %c0_52 = arith.constant 0 : index
    %251 = vector.load %arg15[%c14, %c0_52] : memref<16x32xf32, #tpu.memory_space<vmem>>, vector<2x32xf32>
    tpu.vector_store %arg15[%c14, %c0_52], %250 {strides = array<i32>} : memref<16x32xf32, #tpu.memory_space<vmem>>, vector<2x32xf32>,
    %c0_53 = arith.constant 0 : index
    %c0_54 = arith.constant 0 : index
    %c0_55 = arith.constant 0 : index
    %252 = vector.load %arg14[%c0_53, %c0_54, %c0_55] : memref<2x2x32xf32, #tpu.memory_space<vmem>>, vector<1x2x32xf32>
    %253 = vector.shape_cast %252 : vector<1x2x32xf32> to vector<2x32xf32>
    %254 = vector.shape_cast %250 : vector<2x32xf32> to vector<1x2x32xf32>
    tpu.vector_store %arg14[%c0_53, %c0_54, %c0_55], %254 {strides = array<i32>} : memref<2x2x32xf32, #tpu.memory_space<vmem>>, vector<1x2x32xf32>,
    %c0_56 = arith.constant 0 : index
    %c0_57 = arith.constant 0 : index
    %255 = vector.load %arg15[%c0_56, %c0_57] : memref<16x32xf32, #tpu.memory_space<vmem>>, vector<16x32xf32>
    %c0_58 = arith.constant 0 : index
    %c0_59 = arith.constant 0 : index
    %256 = vector.load %arg7[%c0_58, %c0_59] : memref<32x96xf32, #tpu.memory_space<vmem>>, vector<32x96xf32>
    %cst_60 = arith.constant dense<0.000000e+00> : vector<16x96xf32>
    %257 = tpu.matmul %255, %256, %cst_60 {dimension_numbers = #tpu.dot_dimension_numbers<[1], [0], [0], [1], [0, 0, 1, 1], [], []>} : vector<16x32xf32>, vector<32x96xf32>, vector<16x96xf32> -> vector<16x96xf32>
    %c0_61 = arith.constant 0 : index
    %c0_62 = arith.constant 0 : index
    %258 = vector.load %arg9[%c0_61, %c0_62] : memref<1x96xf32, #tpu.memory_space<vmem>>, vector<1x96xf32>
    %259 = vector.broadcast %258 : vector<1x96xf32> to vector<16x96xf32>
    %260 = arith.addf %257, %259 : vector<16x96xf32>
    %c0_63 = arith.constant 0 : index
    %c0_64 = arith.constant 0 : index
    %261 = vector.load %arg8[%c0_63, %c0_64] : memref<32x96xf32, #tpu.memory_space<vmem>>, vector<32x96xf32>
    %c0_65 = arith.constant 0 : index
    %c0_66 = arith.constant 0 : index
    %262 = vector.load %arg10[%c0_65, %c0_66] : memref<1x32xf32, #tpu.memory_space<vmem>>, vector<1x32xf32>
    %263 = vector.shape_cast %262 : vector<1x32xf32> to vector<1x32xf32>
    %264 = vector.broadcast %263 : vector<1x32xf32> to vector<2x32xf32>
    %c1 = arith.constant 1 : index
    %c0_67 = arith.constant 0 : index
    %c0_68 = arith.constant 0 : index
    %265 = vector.load %arg2[%c1, %c0_67, %c0_68] : memref<2x2x32xf32, #tpu.memory_space<vmem>>, vector<1x2x32xf32>
    %266 = vector.shape_cast %265 : vector<1x2x32xf32> to vector<2x32xf32>
    %267 = vector.extract_strided_slice %260 {offsets = [0, 0], sizes = [2, 96], strides = [1, 1]} : vector<16x96xf32> to vector<2x96xf32>
    %cst_69 = arith.constant dense<0.000000e+00> : vector<2x96xf32>
    %268 = tpu.matmul %266, %261, %cst_69 {dimension_numbers = #tpu.dot_dimension_numbers<[1], [0], [0], [1], [0, 0, 1, 1], [], []>} : vector<2x32xf32>, vector<32x96xf32>, vector<2x96xf32> -> vector<2x96xf32>
    %269 = vector.extract_strided_slice %267 {offsets = [0, 0], sizes = [2, 32], strides = [1, 1]} : vector<2x96xf32> to vector<2x32xf32>
    %270 = vector.extract_strided_slice %268 {offsets = [0, 0], sizes = [2, 32], strides = [1, 1]} : vector<2x96xf32> to vector<2x32xf32>
    %271 = arith.addf %269, %270 : vector<2x32xf32>
    %272 = arith.negf %271 : vector<2x32xf32>
    %273 = math.exp %272 : vector<2x32xf32>
    %cst_70 = arith.constant 1.000000e+00 : f32
    %274 = vector.broadcast %cst_70 : f32 to vector<2x32xf32>
    %275 = arith.addf %274, %273 : vector<2x32xf32>
    %276 = arith.divf %274, %275 : vector<2x32xf32>
    %277 = vector.extract_strided_slice %267 {offsets = [0, 32], sizes = [2, 32], strides = [1, 1]} : vector<2x96xf32> to vector<2x32xf32>
    %278 = vector.extract_strided_slice %268 {offsets = [0, 32], sizes = [2, 32], strides = [1, 1]} : vector<2x96xf32> to vector<2x32xf32>
    %279 = arith.addf %277, %278 : vector<2x32xf32>
    %280 = arith.negf %279 : vector<2x32xf32>
    %281 = math.exp %280 : vector<2x32xf32>
    %cst_71 = arith.constant 1.000000e+00 : f32
    %282 = vector.broadcast %cst_71 : f32 to vector<2x32xf32>
    %283 = arith.addf %282, %281 : vector<2x32xf32>
    %284 = arith.divf %282, %283 : vector<2x32xf32>
    %285 = vector.extract_strided_slice %267 {offsets = [0, 64], sizes = [2, 32], strides = [1, 1]} : vector<2x96xf32> to vector<2x32xf32>
    %286 = vector.extract_strided_slice %268 {offsets = [0, 64], sizes = [2, 32], strides = [1, 1]} : vector<2x96xf32> to vector<2x32xf32>
    %287 = arith.addf %286, %264 : vector<2x32xf32>
    %288 = arith.mulf %276, %287 : vector<2x32xf32>
    %289 = arith.addf %285, %288 : vector<2x32xf32>
    %290 = math.tanh %289 : vector<2x32xf32>
    %cst_72 = arith.constant 1.000000e+00 : f32
    %291 = vector.broadcast %cst_72 : f32 to vector<2x32xf32>
    %292 = arith.subf %291, %284 : vector<2x32xf32>
    %293 = arith.mulf %292, %290 : vector<2x32xf32>
    %294 = arith.mulf %284, %266 : vector<2x32xf32>
    %295 = arith.addf %293, %294 : vector<2x32xf32>
    %c0_73 = arith.constant 0 : index
    %c0_74 = arith.constant 0 : index
    %296 = vector.load %arg15[%c0_73, %c0_74] : memref<16x32xf32, #tpu.memory_space<vmem>>, vector<2x32xf32>
    tpu.vector_store %arg15[%c0_73, %c0_74], %295 {strides = array<i32>} : memref<16x32xf32, #tpu.memory_space<vmem>>, vector<2x32xf32>,
    %297 = vector.extract_strided_slice %260 {offsets = [2, 0], sizes = [2, 96], strides = [1, 1]} : vector<16x96xf32> to vector<2x96xf32>
    %cst_75 = arith.constant dense<0.000000e+00> : vector<2x96xf32>
    %298 = tpu.matmul %295, %261, %cst_75 {dimension_numbers = #tpu.dot_dimension_numbers<[1], [0], [0], [1], [0, 0, 1, 1], [], []>} : vector<2x32xf32>, vector<32x96xf32>, vector<2x96xf32> -> vector<2x96xf32>
    %299 = vector.extract_strided_slice %297 {offsets = [0, 0], sizes = [2, 32], strides = [1, 1]} : vector<2x96xf32> to vector<2x32xf32>
    %300 = vector.extract_strided_slice %298 {offsets = [0, 0], sizes = [2, 32], strides = [1, 1]} : vector<2x96xf32> to vector<2x32xf32>
    %301 = arith.addf %299, %300 : vector<2x32xf32>
    %302 = arith.negf %301 : vector<2x32xf32>
    %303 = math.exp %302 : vector<2x32xf32>
    %cst_76 = arith.constant 1.000000e+00 : f32
    %304 = vector.broadcast %cst_76 : f32 to vector<2x32xf32>
    %305 = arith.addf %304, %303 : vector<2x32xf32>
    %306 = arith.divf %304, %305 : vector<2x32xf32>
    %307 = vector.extract_strided_slice %297 {offsets = [0, 32], sizes = [2, 32], strides = [1, 1]} : vector<2x96xf32> to vector<2x32xf32>
    %308 = vector.extract_strided_slice %298 {offsets = [0, 32], sizes = [2, 32], strides = [1, 1]} : vector<2x96xf32> to vector<2x32xf32>
    %309 = arith.addf %307, %308 : vector<2x32xf32>
    %310 = arith.negf %309 : vector<2x32xf32>
    %311 = math.exp %310 : vector<2x32xf32>
    %cst_77 = arith.constant 1.000000e+00 : f32
    %312 = vector.broadcast %cst_77 : f32 to vector<2x32xf32>
    %313 = arith.addf %312, %311 : vector<2x32xf32>
    %314 = arith.divf %312, %313 : vector<2x32xf32>
    %315 = vector.extract_strided_slice %297 {offsets = [0, 64], sizes = [2, 32], strides = [1, 1]} : vector<2x96xf32> to vector<2x32xf32>
    %316 = vector.extract_strided_slice %298 {offsets = [0, 64], sizes = [2, 32], strides = [1, 1]} : vector<2x96xf32> to vector<2x32xf32>
    %317 = arith.addf %316, %264 : vector<2x32xf32>
    %318 = arith.mulf %306, %317 : vector<2x32xf32>
    %319 = arith.addf %315, %318 : vector<2x32xf32>
    %320 = math.tanh %319 : vector<2x32xf32>
    %cst_78 = arith.constant 1.000000e+00 : f32
    %321 = vector.broadcast %cst_78 : f32 to vector<2x32xf32>
    %322 = arith.subf %321, %314 : vector<2x32xf32>
    %323 = arith.mulf %322, %320 : vector<2x32xf32>
    %324 = arith.mulf %314, %295 : vector<2x32xf32>
    %325 = arith.addf %323, %324 : vector<2x32xf32>
    %c2_79 = arith.constant 2 : index
    %c0_80 = arith.constant 0 : index
    %326 = vector.load %arg15[%c2_79, %c0_80] : memref<16x32xf32, #tpu.memory_space<vmem>>, vector<2x32xf32>
    tpu.vector_store %arg15[%c2_79, %c0_80], %325 {strides = array<i32>} : memref<16x32xf32, #tpu.memory_space<vmem>>, vector<2x32xf32>,
    %327 = vector.extract_strided_slice %260 {offsets = [4, 0], sizes = [2, 96], strides = [1, 1]} : vector<16x96xf32> to vector<2x96xf32>
    %cst_81 = arith.constant dense<0.000000e+00> : vector<2x96xf32>
    %328 = tpu.matmul %325, %261, %cst_81 {dimension_numbers = #tpu.dot_dimension_numbers<[1], [0], [0], [1], [0, 0, 1, 1], [], []>} : vector<2x32xf32>, vector<32x96xf32>, vector<2x96xf32> -> vector<2x96xf32>
    %329 = vector.extract_strided_slice %327 {offsets = [0, 0], sizes = [2, 32], strides = [1, 1]} : vector<2x96xf32> to vector<2x32xf32>
    %330 = vector.extract_strided_slice %328 {offsets = [0, 0], sizes = [2, 32], strides = [1, 1]} : vector<2x96xf32> to vector<2x32xf32>
    %331 = arith.addf %329, %330 : vector<2x32xf32>
    %332 = arith.negf %331 : vector<2x32xf32>
    %333 = math.exp %332 : vector<2x32xf32>
    %cst_82 = arith.constant 1.000000e+00 : f32
    %334 = vector.broadcast %cst_82 : f32 to vector<2x32xf32>
    %335 = arith.addf %334, %333 : vector<2x32xf32>
    %336 = arith.divf %334, %335 : vector<2x32xf32>
    %337 = vector.extract_strided_slice %327 {offsets = [0, 32], sizes = [2, 32], strides = [1, 1]} : vector<2x96xf32> to vector<2x32xf32>
    %338 = vector.extract_strided_slice %328 {offsets = [0, 32], sizes = [2, 32], strides = [1, 1]} : vector<2x96xf32> to vector<2x32xf32>
    %339 = arith.addf %337, %338 : vector<2x32xf32>
    %340 = arith.negf %339 : vector<2x32xf32>
    %341 = math.exp %340 : vector<2x32xf32>
    %cst_83 = arith.constant 1.000000e+00 : f32
    %342 = vector.broadcast %cst_83 : f32 to vector<2x32xf32>
    %343 = arith.addf %342, %341 : vector<2x32xf32>
    %344 = arith.divf %342, %343 : vector<2x32xf32>
    %345 = vector.extract_strided_slice %327 {offsets = [0, 64], sizes = [2, 32], strides = [1, 1]} : vector<2x96xf32> to vector<2x32xf32>
    %346 = vector.extract_strided_slice %328 {offsets = [0, 64], sizes = [2, 32], strides = [1, 1]} : vector<2x96xf32> to vector<2x32xf32>
    %347 = arith.addf %346, %264 : vector<2x32xf32>
    %348 = arith.mulf %336, %347 : vector<2x32xf32>
    %349 = arith.addf %345, %348 : vector<2x32xf32>
    %350 = math.tanh %349 : vector<2x32xf32>
    %cst_84 = arith.constant 1.000000e+00 : f32
    %351 = vector.broadcast %cst_84 : f32 to vector<2x32xf32>
    %352 = arith.subf %351, %344 : vector<2x32xf32>
    %353 = arith.mulf %352, %350 : vector<2x32xf32>
    %354 = arith.mulf %344, %325 : vector<2x32xf32>
    %355 = arith.addf %353, %354 : vector<2x32xf32>
    %c4_85 = arith.constant 4 : index
    %c0_86 = arith.constant 0 : index
    %356 = vector.load %arg15[%c4_85, %c0_86] : memref<16x32xf32, #tpu.memory_space<vmem>>, vector<2x32xf32>
    tpu.vector_store %arg15[%c4_85, %c0_86], %355 {strides = array<i32>} : memref<16x32xf32, #tpu.memory_space<vmem>>, vector<2x32xf32>,
    %357 = vector.extract_strided_slice %260 {offsets = [6, 0], sizes = [2, 96], strides = [1, 1]} : vector<16x96xf32> to vector<2x96xf32>
    %cst_87 = arith.constant dense<0.000000e+00> : vector<2x96xf32>
    %358 = tpu.matmul %355, %261, %cst_87 {dimension_numbers = #tpu.dot_dimension_numbers<[1], [0], [0], [1], [0, 0, 1, 1], [], []>} : vector<2x32xf32>, vector<32x96xf32>, vector<2x96xf32> -> vector<2x96xf32>
    %359 = vector.extract_strided_slice %357 {offsets = [0, 0], sizes = [2, 32], strides = [1, 1]} : vector<2x96xf32> to vector<2x32xf32>
    %360 = vector.extract_strided_slice %358 {offsets = [0, 0], sizes = [2, 32], strides = [1, 1]} : vector<2x96xf32> to vector<2x32xf32>
    %361 = arith.addf %359, %360 : vector<2x32xf32>
    %362 = arith.negf %361 : vector<2x32xf32>
    %363 = math.exp %362 : vector<2x32xf32>
    %cst_88 = arith.constant 1.000000e+00 : f32
    %364 = vector.broadcast %cst_88 : f32 to vector<2x32xf32>
    %365 = arith.addf %364, %363 : vector<2x32xf32>
    %366 = arith.divf %364, %365 : vector<2x32xf32>
    %367 = vector.extract_strided_slice %357 {offsets = [0, 32], sizes = [2, 32], strides = [1, 1]} : vector<2x96xf32> to vector<2x32xf32>
    %368 = vector.extract_strided_slice %358 {offsets = [0, 32], sizes = [2, 32], strides = [1, 1]} : vector<2x96xf32> to vector<2x32xf32>
    %369 = arith.addf %367, %368 : vector<2x32xf32>
    %370 = arith.negf %369 : vector<2x32xf32>
    %371 = math.exp %370 : vector<2x32xf32>
    %cst_89 = arith.constant 1.000000e+00 : f32
    %372 = vector.broadcast %cst_89 : f32 to vector<2x32xf32>
    %373 = arith.addf %372, %371 : vector<2x32xf32>
    %374 = arith.divf %372, %373 : vector<2x32xf32>
    %375 = vector.extract_strided_slice %357 {offsets = [0, 64], sizes = [2, 32], strides = [1, 1]} : vector<2x96xf32> to vector<2x32xf32>
    %376 = vector.extract_strided_slice %358 {offsets = [0, 64], sizes = [2, 32], strides = [1, 1]} : vector<2x96xf32> to vector<2x32xf32>
    %377 = arith.addf %376, %264 : vector<2x32xf32>
    %378 = arith.mulf %366, %377 : vector<2x32xf32>
    %379 = arith.addf %375, %378 : vector<2x32xf32>
    %380 = math.tanh %379 : vector<2x32xf32>
    %cst_90 = arith.constant 1.000000e+00 : f32
    %381 = vector.broadcast %cst_90 : f32 to vector<2x32xf32>
    %382 = arith.subf %381, %374 : vector<2x32xf32>
    %383 = arith.mulf %382, %380 : vector<2x32xf32>
    %384 = arith.mulf %374, %355 : vector<2x32xf32>
    %385 = arith.addf %383, %384 : vector<2x32xf32>
    %c6_91 = arith.constant 6 : index
    %c0_92 = arith.constant 0 : index
    %386 = vector.load %arg15[%c6_91, %c0_92] : memref<16x32xf32, #tpu.memory_space<vmem>>, vector<2x32xf32>
    tpu.vector_store %arg15[%c6_91, %c0_92], %385 {strides = array<i32>} : memref<16x32xf32, #tpu.memory_space<vmem>>, vector<2x32xf32>,
    %387 = vector.extract_strided_slice %260 {offsets = [8, 0], sizes = [2, 96], strides = [1, 1]} : vector<16x96xf32> to vector<2x96xf32>
    %cst_93 = arith.constant dense<0.000000e+00> : vector<2x96xf32>
    %388 = tpu.matmul %385, %261, %cst_93 {dimension_numbers = #tpu.dot_dimension_numbers<[1], [0], [0], [1], [0, 0, 1, 1], [], []>} : vector<2x32xf32>, vector<32x96xf32>, vector<2x96xf32> -> vector<2x96xf32>
    %389 = vector.extract_strided_slice %387 {offsets = [0, 0], sizes = [2, 32], strides = [1, 1]} : vector<2x96xf32> to vector<2x32xf32>
    %390 = vector.extract_strided_slice %388 {offsets = [0, 0], sizes = [2, 32], strides = [1, 1]} : vector<2x96xf32> to vector<2x32xf32>
    %391 = arith.addf %389, %390 : vector<2x32xf32>
    %392 = arith.negf %391 : vector<2x32xf32>
    %393 = math.exp %392 : vector<2x32xf32>
    %cst_94 = arith.constant 1.000000e+00 : f32
    %394 = vector.broadcast %cst_94 : f32 to vector<2x32xf32>
    %395 = arith.addf %394, %393 : vector<2x32xf32>
    %396 = arith.divf %394, %395 : vector<2x32xf32>
    %397 = vector.extract_strided_slice %387 {offsets = [0, 32], sizes = [2, 32], strides = [1, 1]} : vector<2x96xf32> to vector<2x32xf32>
    %398 = vector.extract_strided_slice %388 {offsets = [0, 32], sizes = [2, 32], strides = [1, 1]} : vector<2x96xf32> to vector<2x32xf32>
    %399 = arith.addf %397, %398 : vector<2x32xf32>
    %400 = arith.negf %399 : vector<2x32xf32>
    %401 = math.exp %400 : vector<2x32xf32>
    %cst_95 = arith.constant 1.000000e+00 : f32
    %402 = vector.broadcast %cst_95 : f32 to vector<2x32xf32>
    %403 = arith.addf %402, %401 : vector<2x32xf32>
    %404 = arith.divf %402, %403 : vector<2x32xf32>
    %405 = vector.extract_strided_slice %387 {offsets = [0, 64], sizes = [2, 32], strides = [1, 1]} : vector<2x96xf32> to vector<2x32xf32>
    %406 = vector.extract_strided_slice %388 {offsets = [0, 64], sizes = [2, 32], strides = [1, 1]} : vector<2x96xf32> to vector<2x32xf32>
    %407 = arith.addf %406, %264 : vector<2x32xf32>
    %408 = arith.mulf %396, %407 : vector<2x32xf32>
    %409 = arith.addf %405, %408 : vector<2x32xf32>
    %410 = math.tanh %409 : vector<2x32xf32>
    %cst_96 = arith.constant 1.000000e+00 : f32
    %411 = vector.broadcast %cst_96 : f32 to vector<2x32xf32>
    %412 = arith.subf %411, %404 : vector<2x32xf32>
    %413 = arith.mulf %412, %410 : vector<2x32xf32>
    %414 = arith.mulf %404, %385 : vector<2x32xf32>
    %415 = arith.addf %413, %414 : vector<2x32xf32>
    %c8_97 = arith.constant 8 : index
    %c0_98 = arith.constant 0 : index
    %416 = vector.load %arg15[%c8_97, %c0_98] : memref<16x32xf32, #tpu.memory_space<vmem>>, vector<2x32xf32>
    tpu.vector_store %arg15[%c8_97, %c0_98], %415 {strides = array<i32>} : memref<16x32xf32, #tpu.memory_space<vmem>>, vector<2x32xf32>,
    %417 = vector.extract_strided_slice %260 {offsets = [10, 0], sizes = [2, 96], strides = [1, 1]} : vector<16x96xf32> to vector<2x96xf32>
    %cst_99 = arith.constant dense<0.000000e+00> : vector<2x96xf32>
    %418 = tpu.matmul %415, %261, %cst_99 {dimension_numbers = #tpu.dot_dimension_numbers<[1], [0], [0], [1], [0, 0, 1, 1], [], []>} : vector<2x32xf32>, vector<32x96xf32>, vector<2x96xf32> -> vector<2x96xf32>
    %419 = vector.extract_strided_slice %417 {offsets = [0, 0], sizes = [2, 32], strides = [1, 1]} : vector<2x96xf32> to vector<2x32xf32>
    %420 = vector.extract_strided_slice %418 {offsets = [0, 0], sizes = [2, 32], strides = [1, 1]} : vector<2x96xf32> to vector<2x32xf32>
    %421 = arith.addf %419, %420 : vector<2x32xf32>
    %422 = arith.negf %421 : vector<2x32xf32>
    %423 = math.exp %422 : vector<2x32xf32>
    %cst_100 = arith.constant 1.000000e+00 : f32
    %424 = vector.broadcast %cst_100 : f32 to vector<2x32xf32>
    %425 = arith.addf %424, %423 : vector<2x32xf32>
    %426 = arith.divf %424, %425 : vector<2x32xf32>
    %427 = vector.extract_strided_slice %417 {offsets = [0, 32], sizes = [2, 32], strides = [1, 1]} : vector<2x96xf32> to vector<2x32xf32>
    %428 = vector.extract_strided_slice %418 {offsets = [0, 32], sizes = [2, 32], strides = [1, 1]} : vector<2x96xf32> to vector<2x32xf32>
    %429 = arith.addf %427, %428 : vector<2x32xf32>
    %430 = arith.negf %429 : vector<2x32xf32>
    %431 = math.exp %430 : vector<2x32xf32>
    %cst_101 = arith.constant 1.000000e+00 : f32
    %432 = vector.broadcast %cst_101 : f32 to vector<2x32xf32>
    %433 = arith.addf %432, %431 : vector<2x32xf32>
    %434 = arith.divf %432, %433 : vector<2x32xf32>
    %435 = vector.extract_strided_slice %417 {offsets = [0, 64], sizes = [2, 32], strides = [1, 1]} : vector<2x96xf32> to vector<2x32xf32>
    %436 = vector.extract_strided_slice %418 {offsets = [0, 64], sizes = [2, 32], strides = [1, 1]} : vector<2x96xf32> to vector<2x32xf32>
    %437 = arith.addf %436, %264 : vector<2x32xf32>
    %438 = arith.mulf %426, %437 : vector<2x32xf32>
    %439 = arith.addf %435, %438 : vector<2x32xf32>
    %440 = math.tanh %439 : vector<2x32xf32>
    %cst_102 = arith.constant 1.000000e+00 : f32
    %441 = vector.broadcast %cst_102 : f32 to vector<2x32xf32>
    %442 = arith.subf %441, %434 : vector<2x32xf32>
    %443 = arith.mulf %442, %440 : vector<2x32xf32>
    %444 = arith.mulf %434, %415 : vector<2x32xf32>
    %445 = arith.addf %443, %444 : vector<2x32xf32>
    %c10_103 = arith.constant 10 : index
    %c0_104 = arith.constant 0 : index
    %446 = vector.load %arg15[%c10_103, %c0_104] : memref<16x32xf32, #tpu.memory_space<vmem>>, vector<2x32xf32>
    tpu.vector_store %arg15[%c10_103, %c0_104], %445 {strides = array<i32>} : memref<16x32xf32, #tpu.memory_space<vmem>>, vector<2x32xf32>,
    %447 = vector.extract_strided_slice %260 {offsets = [12, 0], sizes = [2, 96], strides = [1, 1]} : vector<16x96xf32> to vector<2x96xf32>
    %cst_105 = arith.constant dense<0.000000e+00> : vector<2x96xf32>
    %448 = tpu.matmul %445, %261, %cst_105 {dimension_numbers = #tpu.dot_dimension_numbers<[1], [0], [0], [1], [0, 0, 1, 1], [], []>} : vector<2x32xf32>, vector<32x96xf32>, vector<2x96xf32> -> vector<2x96xf32>
    %449 = vector.extract_strided_slice %447 {offsets = [0, 0], sizes = [2, 32], strides = [1, 1]} : vector<2x96xf32> to vector<2x32xf32>
    %450 = vector.extract_strided_slice %448 {offsets = [0, 0], sizes = [2, 32], strides = [1, 1]} : vector<2x96xf32> to vector<2x32xf32>
    %451 = arith.addf %449, %450 : vector<2x32xf32>
    %452 = arith.negf %451 : vector<2x32xf32>
    %453 = math.exp %452 : vector<2x32xf32>
    %cst_106 = arith.constant 1.000000e+00 : f32
    %454 = vector.broadcast %cst_106 : f32 to vector<2x32xf32>
    %455 = arith.addf %454, %453 : vector<2x32xf32>
    %456 = arith.divf %454, %455 : vector<2x32xf32>
    %457 = vector.extract_strided_slice %447 {offsets = [0, 32], sizes = [2, 32], strides = [1, 1]} : vector<2x96xf32> to vector<2x32xf32>
    %458 = vector.extract_strided_slice %448 {offsets = [0, 32], sizes = [2, 32], strides = [1, 1]} : vector<2x96xf32> to vector<2x32xf32>
    %459 = arith.addf %457, %458 : vector<2x32xf32>
    %460 = arith.negf %459 : vector<2x32xf32>
    %461 = math.exp %460 : vector<2x32xf32>
    %cst_107 = arith.constant 1.000000e+00 : f32
    %462 = vector.broadcast %cst_107 : f32 to vector<2x32xf32>
    %463 = arith.addf %462, %461 : vector<2x32xf32>
    %464 = arith.divf %462, %463 : vector<2x32xf32>
    %465 = vector.extract_strided_slice %447 {offsets = [0, 64], sizes = [2, 32], strides = [1, 1]} : vector<2x96xf32> to vector<2x32xf32>
    %466 = vector.extract_strided_slice %448 {offsets = [0, 64], sizes = [2, 32], strides = [1, 1]} : vector<2x96xf32> to vector<2x32xf32>
    %467 = arith.addf %466, %264 : vector<2x32xf32>
    %468 = arith.mulf %456, %467 : vector<2x32xf32>
    %469 = arith.addf %465, %468 : vector<2x32xf32>
    %470 = math.tanh %469 : vector<2x32xf32>
    %cst_108 = arith.constant 1.000000e+00 : f32
    %471 = vector.broadcast %cst_108 : f32 to vector<2x32xf32>
    %472 = arith.subf %471, %464 : vector<2x32xf32>
    %473 = arith.mulf %472, %470 : vector<2x32xf32>
    %474 = arith.mulf %464, %445 : vector<2x32xf32>
    %475 = arith.addf %473, %474 : vector<2x32xf32>
    %c12_109 = arith.constant 12 : index
    %c0_110 = arith.constant 0 : index
    %476 = vector.load %arg15[%c12_109, %c0_110] : memref<16x32xf32, #tpu.memory_space<vmem>>, vector<2x32xf32>
    tpu.vector_store %arg15[%c12_109, %c0_110], %475 {strides = array<i32>} : memref<16x32xf32, #tpu.memory_space<vmem>>, vector<2x32xf32>,
    %477 = vector.extract_strided_slice %260 {offsets = [14, 0], sizes = [2, 96], strides = [1, 1]} : vector<16x96xf32> to vector<2x96xf32>
    %cst_111 = arith.constant dense<0.000000e+00> : vector<2x96xf32>
    %478 = tpu.matmul %475, %261, %cst_111 {dimension_numbers = #tpu.dot_dimension_numbers<[1], [0], [0], [1], [0, 0, 1, 1], [], []>} : vector<2x32xf32>, vector<32x96xf32>, vector<2x96xf32> -> vector<2x96xf32>
    %479 = vector.extract_strided_slice %477 {offsets = [0, 0], sizes = [2, 32], strides = [1, 1]} : vector<2x96xf32> to vector<2x32xf32>
    %480 = vector.extract_strided_slice %478 {offsets = [0, 0], sizes = [2, 32], strides = [1, 1]} : vector<2x96xf32> to vector<2x32xf32>
    %481 = arith.addf %479, %480 : vector<2x32xf32>
    %482 = arith.negf %481 : vector<2x32xf32>
    %483 = math.exp %482 : vector<2x32xf32>
    %cst_112 = arith.constant 1.000000e+00 : f32
    %484 = vector.broadcast %cst_112 : f32 to vector<2x32xf32>
    %485 = arith.addf %484, %483 : vector<2x32xf32>
    %486 = arith.divf %484, %485 : vector<2x32xf32>
    %487 = vector.extract_strided_slice %477 {offsets = [0, 32], sizes = [2, 32], strides = [1, 1]} : vector<2x96xf32> to vector<2x32xf32>
    %488 = vector.extract_strided_slice %478 {offsets = [0, 32], sizes = [2, 32], strides = [1, 1]} : vector<2x96xf32> to vector<2x32xf32>
    %489 = arith.addf %487, %488 : vector<2x32xf32>
    %490 = arith.negf %489 : vector<2x32xf32>
    %491 = math.exp %490 : vector<2x32xf32>
    %cst_113 = arith.constant 1.000000e+00 : f32
    %492 = vector.broadcast %cst_113 : f32 to vector<2x32xf32>
    %493 = arith.addf %492, %491 : vector<2x32xf32>
    %494 = arith.divf %492, %493 : vector<2x32xf32>
    %495 = vector.extract_strided_slice %477 {offsets = [0, 64], sizes = [2, 32], strides = [1, 1]} : vector<2x96xf32> to vector<2x32xf32>
    %496 = vector.extract_strided_slice %478 {offsets = [0, 64], sizes = [2, 32], strides = [1, 1]} : vector<2x96xf32> to vector<2x32xf32>
    %497 = arith.addf %496, %264 : vector<2x32xf32>
    %498 = arith.mulf %486, %497 : vector<2x32xf32>
    %499 = arith.addf %495, %498 : vector<2x32xf32>
    %500 = math.tanh %499 : vector<2x32xf32>
    %cst_114 = arith.constant 1.000000e+00 : f32
    %501 = vector.broadcast %cst_114 : f32 to vector<2x32xf32>
    %502 = arith.subf %501, %494 : vector<2x32xf32>
    %503 = arith.mulf %502, %500 : vector<2x32xf32>
    %504 = arith.mulf %494, %475 : vector<2x32xf32>
    %505 = arith.addf %503, %504 : vector<2x32xf32>
    %c14_115 = arith.constant 14 : index
    %c0_116 = arith.constant 0 : index
    %506 = vector.load %arg15[%c14_115, %c0_116] : memref<16x32xf32, #tpu.memory_space<vmem>>, vector<2x32xf32>
    tpu.vector_store %arg15[%c14_115, %c0_116], %505 {strides = array<i32>} : memref<16x32xf32, #tpu.memory_space<vmem>>, vector<2x32xf32>,
    %c1_117 = arith.constant 1 : index
    %c0_118 = arith.constant 0 : index
    %c0_119 = arith.constant 0 : index
    %507 = vector.load %arg14[%c1_117, %c0_118, %c0_119] : memref<2x2x32xf32, #tpu.memory_space<vmem>>, vector<1x2x32xf32>
    %508 = vector.shape_cast %507 : vector<1x2x32xf32> to vector<2x32xf32>
    %509 = vector.shape_cast %505 : vector<2x32xf32> to vector<1x2x32xf32>
    tpu.vector_store %arg14[%c1_117, %c0_118, %c0_119], %509 {strides = array<i32>} : memref<2x2x32xf32, #tpu.memory_space<vmem>>, vector<1x2x32xf32>,
    %c0_120 = arith.constant 0 : index
    %c0_121 = arith.constant 0 : index
    %510 = vector.load %arg15[%c0_120, %c0_121] : memref<16x32xf32, #tpu.memory_space<vmem>>, vector<16x32xf32>
    %c0_122 = arith.constant 0 : index
    %c0_123 = arith.constant 0 : index
    %511 = vector.load %arg11[%c0_122, %c0_123] : memref<32x128xf32, #tpu.memory_space<vmem>>, vector<32x128xf32>
    %cst_124 = arith.constant dense<0.000000e+00> : vector<16x128xf32>
    %512 = tpu.matmul %510, %511, %cst_124 {dimension_numbers = #tpu.dot_dimension_numbers<[1], [0], [0], [1], [0, 0, 1, 1], [], []>} : vector<16x32xf32>, vector<32x128xf32>, vector<16x128xf32> -> vector<16x128xf32>
    %c0_125 = arith.constant 0 : index
    %c0_126 = arith.constant 0 : index
    %513 = vector.load %arg12[%c0_125, %c0_126] : memref<1x128xf32, #tpu.memory_space<vmem>>, vector<1x128xf32>
    %514 = vector.broadcast %513 : vector<1x128xf32> to vector<16x128xf32>
    %515 = arith.addf %512, %514 : vector<16x128xf32>
    %c0_127 = arith.constant 0 : index
    %c0_128 = arith.constant 0 : index
    %516 = vector.load %arg13[%c0_127, %c0_128] : memref<16x128xf32, #tpu.memory_space<vmem>>, vector<16x128xf32>
    tpu.vector_store %arg13[%c0_127, %c0_128], %515 {strides = array<i32>} : memref<16x128xf32, #tpu.memory_space<vmem>>, vector<16x128xf32>,
    return
  }
  func.func @transform_0(%arg0: i32) -> (i32, i32) {
    %c0_i32 = arith.constant 0 : i32
    %c0_i32_0 = arith.constant 0 : i32
    %c0_i32_1 = arith.constant 0 : i32
    return %c0_i32, %c0_i32_0 : i32, i32
  }
  func.func @transform_1(%arg0: i32) -> (i32, i32, i32) {
    %c0_i32 = arith.constant 0 : i32
    %c0_i32_0 = arith.constant 0 : i32
    %c0_i32_1 = arith.constant 0 : i32
    %c0_i32_2 = arith.constant 0 : i32
    return %c0_i32, %c0_i32_0, %c0_i32_1 : i32, i32, i32
  }
  func.func @transform_2(%arg0: i32) -> (i32, i32) {
    %c0_i32 = arith.constant 0 : i32
    %c0_i32_0 = arith.constant 0 : i32
    %c0_i32_1 = arith.constant 0 : i32
    return %c0_i32, %c0_i32_0 : i32, i32
  }
  func.func @transform_3(%arg0: i32) -> (i32, i32) {
    %c0_i32 = arith.constant 0 : i32
    %c0_i32_0 = arith.constant 0 : i32
    %c0_i32_1 = arith.constant 0 : i32
    return %c0_i32, %c0_i32_0 : i32, i32
  }
  func.func @transform_4(%arg0: i32) -> (i32, i32) {
    %c0_i32 = arith.constant 0 : i32
    %c0_i32_0 = arith.constant 0 : i32
    %c0_i32_1 = arith.constant 0 : i32
    return %c0_i32, %c0_i32_0 : i32, i32
  }
  func.func @transform_5(%arg0: i32) -> (i32, i32) {
    %c0_i32 = arith.constant 0 : i32
    %c0_i32_0 = arith.constant 0 : i32
    %c0_i32_1 = arith.constant 0 : i32
    return %c0_i32, %c0_i32_0 : i32, i32
  }
  func.func @transform_6(%arg0: i32) -> (i32, i32) {
    %c0_i32 = arith.constant 0 : i32
    %c0_i32_0 = arith.constant 0 : i32
    %c0_i32_1 = arith.constant 0 : i32
    return %c0_i32, %c0_i32_0 : i32, i32
  }
  func.func @transform_7(%arg0: i32) -> (i32, i32) {
    %c0_i32 = arith.constant 0 : i32
    %c0_i32_0 = arith.constant 0 : i32
    %c0_i32_1 = arith.constant 0 : i32
    return %c0_i32, %c0_i32_0 : i32, i32
  }
  func.func @transform_8(%arg0: i32) -> (i32, i32) {
    %c0_i32 = arith.constant 0 : i32
    %c0_i32_0 = arith.constant 0 : i32
    %c0_i32_1 = arith.constant 0 : i32
    return %c0_i32, %c0_i32_0 : i32, i32
  }
  func.func @transform_9(%arg0: i32) -> (i32, i32) {
    %c0_i32 = arith.constant 0 : i32
    %c0_i32_0 = arith.constant 0 : i32
    %c0_i32_1 = arith.constant 0 : i32
    return %c0_i32, %c0_i32_0 : i32, i32
  }
  func.func @transform_10(%arg0: i32) -> (i32, i32) {
    %c0_i32 = arith.constant 0 : i32
    %c0_i32_0 = arith.constant 0 : i32
    %c0_i32_1 = arith.constant 0 : i32
    return %c0_i32, %c0_i32_0 : i32, i32
  }
  func.func @transform_11(%arg0: i32) -> (i32, i32) {
    %c0_i32 = arith.constant 0 : i32
    %c0_i32_0 = arith.constant 0 : i32
    %c0_i32_1 = arith.constant 0 : i32
    return %c0_i32, %c0_i32_0 : i32, i32
  }
  func.func @transform_12(%arg0: i32) -> (i32, i32) {
    %c0_i32 = arith.constant 0 : i32
    %c0_i32_0 = arith.constant 0 : i32
    %c0_i32_1 = arith.constant 0 : i32
    return %c0_i32, %c0_i32_0 : i32, i32
  }
  func.func @transform_13(%arg0: i32) -> (i32, i32, i32) {
    %c0_i32 = arith.constant 0 : i32
    %c0_i32_0 = arith.constant 0 : i32
    %c0_i32_1 = arith.constant 0 : i32
    %c0_i32_2 = arith.constant 0 : i32
    return %c0_i32, %c0_i32_0, %c0_i32_1 : i32, i32, i32
  }
}

</mosaic_0001>

<bundles_post_ra>
// kernel: tpu_custom_call.1
= control target key start
LH: loop header
LB: loop body
LE: loop exit
PB: predicated region body
PF: predicated region fallthrough
CT: control target
= control target key end

     0   :  { %19 = vsyncpa [#allocation4], 0  ;;  %s3446_s0 = inlined_call_operand.vmem [shape: f32[16,16], index: 0, kind: input, shape index: {}]   ;;  %s3447_s1 = inlined_call_operand.hbm [shape: f32[2,2,32], index: 1, kind: input, shape index: {}, may-alias: {1,13}]   ;;  %s3448_s2 = inlined_call_operand.hbm [shape: f32[16,96], index: 2, kind: input, shape index: {}]   ;;  %s3449_s3 = inlined_call_operand.hbm [shape: f32[32,96], index: 3, kind: input, shape index: {}]   ;;  %s3450_s4 = inlined_call_operand.vmem [shape: f32[1,96], index: 4, kind: input, shape index: {}]   ;;  %s3451_s5 = inlined_call_operand.vmem [shape: f32[1,32], index: 5, kind: input, shape index: {}]   ;;  %s3452_s6 = inlined_call_operand.hbm [shape: f32[32,96], index: 6, kind: input, shape index: {}]   ;;  %s3453_s7 = inlined_call_operand.hbm [shape: f32[32,96], index: 7, kind: input, shape index: {}]   ;;  %s3454_s8 = inlined_call_operand.vmem [shape: f32[1,96], index: 8, kind: input, shape index: {}]   ;;  %s3455_s9 = inlined_call_operand.vmem [shape: f32[1,32], index: 9, kind: input, shape index: {}]   ;;  %s3456_s10 = inlined_call_operand.hbm [shape: f32[32,128], index: 10, kind: input, shape index: {}]   ;;  %s3457_s11 = inlined_call_operand.vmem [shape: f32[1,128], index: 11, kind: input, shape index: {}]   ;;  %s3458_s12 = inlined_call_operand.hbm [shape: f32[16,128], index: 12, kind: output, shape index: {0}]   ;;  %s3459_s13 = inlined_call_operand.hbm [shape: f32[2,2,32], index: 13, kind: output, shape index: {1}, may-alias: {1,13}]  }
   0x1   :  { %20 = vsyncpa [#allocation7], 0 }
   0x2   :  { %21 = vsyncpa [#allocation10], 0 }
   0x3   :  { %22 = vsyncpa [#allocation13], 0 }
   0x4   :  { %23 = vsyncpa [#allocation5], 0 }
   0x5   :  { %24 = vsyncpa [#allocation16], 0  ;;  %s2887_s25 = smov [#allocation6]  }
   0x6   :  { %s44_s26 = sshll.u32 %s2887_s25, 4  ;;  %s45_s26 = int_to_ptr.vmem [resolvable:$true] %s44_s26 }
   0x7   :  { %s2723_s27 = scalar_lea.vmem %s45_s26, 256  ;;  %p2728_p1 = scmp.lt.s32.totalorder %s45_s26, %s45_s26 }
   0x8   :  { %p2724_p0 = scmp.ne.s32.totalorder %s45_s26, %s2723_s27  ;;  %p2729_p2 = scmp.lt.s32.totalorder %s2723_s27, %s2723_s27 }
   0xa   :  { %p2730_p3 = por %p2729_p2, %p2728_p1 }
   0xc   :  { %p2731_p4 = pnand %p2730_p3, %p2724_p0 }
   0xe   :  { %2734 = shalt.err (!%p2731_p4)
}
   0xf   :  { %s2888_s28 = smov 128   ;;  %s2889_s29 = smov 8  }
  0x10   :  { %50 = dma.hbm_to_vmem [thread:$0]  %s3448_s2, 256, %s45_s26, [#allocation7], %s2888_s28, %s2888_s28, %s2889_s29  }
  0x11   :  { %s2890_s15 = smov [#allocation9]   ;;  %s2891_s17 = smov [#allocation3]  }
  0x12   :  { %s72_s16 = sshll.u32 %s2890_s15, 4  ;;  %s32_s18 = sshll.u32 %s2891_s17, 4  ;;  %s73_s16 = int_to_ptr.vmem [resolvable:$true] %s72_s16  ;;  %s33_s18 = int_to_ptr.vmem [resolvable:$true] %s32_s18 }
  0x13   :  { %s2743_s19 = scalar_lea.vmem %s73_s16, 512  ;;  %p2748_p6 = scmp.lt.s32.totalorder %s73_s16, %s73_s16 }
  0x14   :  { %p2744_p5 = scmp.ne.s32.totalorder %s73_s16, %s2743_s19  ;;  %p2749_p7 = scmp.lt.s32.totalorder %s2743_s19, %s2743_s19 }
  0x16   :  { %p2750_p8 = por %p2749_p7, %p2748_p6 }
  0x18   :  { %p2751_p9 = pnand %p2750_p8, %p2744_p5 }
  0x1a   :  { %2754 = shalt.err (!%p2751_p9)
}
  0x1b   :  { %78 = dma.hbm_to_vmem [thread:$0]  %s3452_s6, 512, %s73_s16, [#allocation10], %s2888_s28, %s2888_s28, %s2889_s29  }
  0x1c   :  { %s2763_s2 = scalar_lea.vmem %s33_s18, 64  ;;  %p2768_p11 = scmp.lt.s32.totalorder %s33_s18, %s33_s18 }
  0x1d   :  { %p2764_p10 = scmp.ne.s32.totalorder %s33_s18, %s2763_s2  ;;  %p2769_p12 = scmp.lt.s32.totalorder %s2763_s2, %s2763_s2 }
  0x1f   :  { %p2770_p13 = por %p2769_p12, %p2768_p11 }
  0x21   :  { %p2771_p0 = pnand %p2770_p13, %p2764_p10 }
  0x23   :  { %2774 = shalt.err (!%p2771_p0)
}
  0x24   :  { %s2892_s22 = smov 32   ;;  %s2893_s23 = smov 2  }
  0x25   :  { %38 = dma.hbm_to_vmem [thread:$0]  %s3447_s1, 64, %s33_s18, [#allocation4], %s2892_s22, %s2892_s22, %s2893_s23  }
  0x26   :  { %s2894_s26 = smov [#allocation8]   ;;  %s2895_s6 = smov [#allocation11]  }
  0x27   :  { %s56_s27 = sshll.u32 %s2894_s26, 4  ;;  %s84_s30 = sshll.u32 %s2895_s6, 4  ;;  %s57_s27 = int_to_ptr.vmem [resolvable:$true] %s56_s27  ;;  %s85_s30 = int_to_ptr.vmem [resolvable:$true] %s84_s30 }
  0x28   :  { %s2783_s14 = scalar_lea.vmem %s57_s27, 512  ;;  %p2788_p2 = scmp.lt.s32.totalorder %s57_s27, %s57_s27 }
  0x29   :  { %p2784_p1 = scmp.ne.s32.totalorder %s57_s27, %s2783_s14  ;;  %p2789_p3 = scmp.lt.s32.totalorder %s2783_s14, %s2783_s14 }
  0x2b   :  { %p2790_p4 = por %p2789_p3, %p2788_p2 }
  0x2d   :  { %p2791_p5 = pnand %p2790_p4, %p2784_p1 }
  0x2f   :  { %2794 = shalt.err (!%p2791_p5)
}
  0x30   :  { %62 = dma.hbm_to_vmem [thread:$0]  %s3449_s3, 512, %s57_s27, [#allocation7], %s2888_s28, %s2888_s28, %s2889_s29  }
  0x31   :  { %s2803_s1 = scalar_lea.vmem %s85_s30, 512  ;;  %p2808_p7 = scmp.lt.s32.totalorder %s85_s30, %s85_s30 }
  0x32   :  { %p2804_p6 = scmp.ne.s32.totalorder %s85_s30, %s2803_s1  ;;  %p2809_p8 = scmp.lt.s32.totalorder %s2803_s1, %s2803_s1 }
  0x34   :  { %p2810_p9 = por %p2809_p8, %p2808_p7 }
  0x36   :  { %p2811_p10 = pnand %p2810_p9, %p2804_p6 }
  0x38   :  { %2814 = shalt.err (!%p2811_p10)
}
  0x39   :  { %90 = dma.hbm_to_vmem [thread:$0]  %s3453_s7, 512, %s85_s30, [#allocation10], %s2888_s28, %s2888_s28, %s2889_s29  }
  0x3a   :  { %s2896_s19 = smov [#allocation12]  }
  0x3b   :  { %s100_s20 = sshll.u32 %s2896_s19, 4  ;;  %s101_s20 = int_to_ptr.vmem [resolvable:$true] %s100_s20 }
  0x3c   :  { %s2823_s21 = scalar_lea.vmem %s101_s20, 512  ;;  %p2828_p12 = scmp.lt.s32.totalorder %s101_s20, %s101_s20 }
  0x3d   :  { %p2824_p11 = scmp.ne.s32.totalorder %s101_s20, %s2823_s21  ;;  %p2829_p13 = scmp.lt.s32.totalorder %s2823_s21, %s2823_s21 }
  0x3f   :  { %p2830_p0 = por %p2829_p13, %p2828_p12 }
  0x41   :  { %p2831_p1 = pnand %p2830_p0, %p2824_p11 }
  0x43   :  { %2834 = shalt.err (!%p2831_p1)
}
  0x44   :  { %106 = dma.hbm_to_vmem [thread:$0]  %s3456_s10, 512, %s101_s20, [#allocation13], %s2888_s28, %s2888_s28, %s2889_s29  }
  0x45   :  { %2875 = dma.done.wait [#allocation4], 64  }
  0x46   :  { %2876 = vsyncadd [#allocation4], 4294967232 }
  0x47   :  { %2877 = dma.done.wait [#allocation7], 768  }
  0x48   :  { %2878 = vsyncadd [#allocation7], 4294966528 }
  0x49   :  { %2879 = dma.done.wait [#allocation10], 1024  }
  0x4a   :  { %2880 = vsyncadd [#allocation10], 4294966272 }
  0x4b   :  { %2881 = dma.done.wait [#allocation13], 512  }
  0x4c   :  { %2882 = vsyncadd [#allocation13], 4294966784  ;;  %v2897_v0 = vmov 0.0   ;;  %vm2898_vm0 = vmmov 0   ;;  %v130_v1 = vld [vmem:[#allocation6 + $0x8] sm:$0xff]  ;;  %v129_v3 = vld [vmem:[#allocation6] sm:$0xff] }
  0x4d   :  { %2405 = vmatprep.subr.mxu1 %v2897_v0  ;;  %2413 = vmatprep.mubr.msk.f32.mxu1 %vm2898_vm0, %v2897_v0  ;;  %v3012_v2 = vld [vmem:[#allocation8 + $0x18] sm:$0xff]  ;;  %v3015_v4 = vld [vmem:[#allocation8 + $0x10] sm:$0xff]  ;;  %vm138_vm1 = vcmask 130048   ;;  %v128_v6 = vld [vmem:[%s3446_s0 + $0x8] sm:$0xff]  ;;  %vm231_vm2 = vcmask 261120   ;;  %vm342_vm3 = vcmask 254976  }
  0x4e   :  { %2398 = vmatprep.subr.mxu0 %v130_v1  ;;  %2406 = vmatpush3.msra.mxu1 %v3012_v2  ;;  %v127_v5 = vld [vmem:[%s3446_s0] sm:$0xff]  ;;  %v3025_v7 = vld [vmem:[#allocation8 + $0x8] sm:$0xff]  ;;  %s2899_s0 = smov 64   ;;  %vm453_vm4 = vcmask 257026   ;;  %vm681_vm5 = vcmask 261126   ;;  %vm567_vm6 = vcmask 259076  }
  0x4f   :  { %2399 = vmatpush3.msra.mxu0 %v130_v1  ;;  %2407 = vmatprep.subr.mxu1 %v2897_v0  ;;  %v2262_v8 = vld [vmem:[%s3451_s5] ss:$0 sm:$0xff]  ;;  %v3031_v9 = vld [vmem:[#allocation8] sm:$0xff]  ;;  %v230_v10 = vld [vmem:[#allocation3] sm:$0x3] }
  0x50   :  { %2400 = vmatprep.subr.mxu0 %v129_v3  ;;  %2408 = vmatpush3.msra.mxu1 %v3015_v4  ;;  %v2259_v12 = vld [vmem:[%s3450_s4] ss:$0 sm:$0xff]  ;;  %s2900_s4 = smov 96  }
  0x51   :  { %2401 = vmatpush3.msra.mxu0 %v129_v3  ;;  %2402 = vmatprep.mubr.msk.f32.mxu0 %vm138_vm1, %v127_v5 }
  0x52   :  { %2409 = vmatprep.subr.mxu1 %v2897_v0  ;;  %2403 = vmatmul.mubr.msk.f32.vlgmr.msra.gmra.mxu0 %vm138_vm1, %v128_v6 }
  0x53   :  { %2410 = vmatpush3.msra.mxu1 %v3025_v7  ;;  %312 = vrot.lane.b32.xlu0 %v2262_v8, %s2899_s0 }
  0x54   :  { %2411 = vmatprep.subr.mxu1 %v2897_v0  ;;  %2416 = vmatprep.subr.mxu0 %v2897_v0 }
  0x55   :  { %2412 = vmatpush3.msra.mxu1 %v3031_v9  ;;  %2417 = vmatpush3.msra.mxu0 %v3012_v2 }
  0x56   :  { %2414 = vmatmul.mubr.msk.f32.vlgmr.msra.gmra.mxu1 %vm231_vm2, %v230_v10  ;;  %2418 = vmatprep.subr.mxu0 %v2897_v0 }
  0x57   :  { %2419 = vmatpush3.msra.mxu0 %v3015_v4  ;;  %2424 = vmatprep.mubr.msk.f32.mxu0 %vm2898_vm0, %v2897_v0 }
  0x58   :  { %2420 = vmatprep.subr.mxu0 %v2897_v0  ;;  %2427 = vmatprep.subr.mxu1 %v2897_v0 }
  0x59   :  { %2421 = vmatpush3.msra.mxu0 %v3025_v7  ;;  %2428 = vmatpush3.msra.mxu1 %v3012_v2 }
  0x5a   :  { %2422 = vmatprep.subr.mxu0 %v2897_v0  ;;  %2429 = vmatprep.subr.mxu1 %v2897_v0 }
  0x5b   :  { %2423 = vmatpush3.msra.mxu0 %v3031_v9  ;;  %2430 = vmatpush3.msra.mxu1 %v3015_v4 }
  0x5c   :  { %2431 = vmatprep.subr.mxu1 %v2897_v0  ;;  %2435 = vmatprep.mubr.msk.f32.mxu1 %vm2898_vm0, %v2897_v0 }
  0x5d   :  { %2432 = vmatpush3.msra.mxu1 %v3025_v7  ;;  %2438 = vmatprep.subr.mxu0 %v2897_v0 }
  0x5e   :  { %2433 = vmatprep.subr.mxu1 %v2897_v0 }
  0x5f   :  { %2434 = vmatpush3.msra.mxu1 %v3031_v9 }
  0x60   :  { %2449 = vmatprep.subr.mxu1 %v2897_v0 }
  0xc5   :  { %v3065_v14 = vpop.permute.xlu0 %312 }
 0x112   :  { %v2404_v11 = vpop.f32.mrf.mxu0 }
 0x113   :  { %v3063_v13 = vadd.f32 %v2404_v11, %v2259_v12 }
 0x114   :  { %v211_v18 = vpop.f32.mrf.mxu0 }
 0x115   :  { %v3070_v19 = vadd.f32 %v2259_v12, %v211_v18 }
 0x116   :  { %v301_v15 = vpop.f32.mrf.mxu1 }
 0x117   :  { %v315_v16 = vadd.f32 %v3065_v14, %v301_v15  ;;  %v305_v20 = vadd.f32 %v301_v15, %v3070_v19 }
 0x118   :  { %v2415_v17 = vpop.f32.mrf.mxu1 }
 0x119   :  { %317 = vrot.lane.b32.xlu0 %v315_v16, %s2899_s0  ;;  %v2264_v21 = vmul.f32 -1.442695, %v305_v20 }
 0x11b   :  { %2619 = vpow2.f32 %v2264_v21 }
 0x11d   :  { %333 = vrot.lane.b32.xlu0 %v230_v10, %s2892_s22 }
 0x128   :  { %v2620_v22 = vpop.eup %2619 }
 0x129   :  { %v309_v23 = vadd.f32 1.0, %v2620_v22 }
 0x12b   :  { %2621 = vrcp.f32 %v309_v23 }
 0x138   :  { %v2622_v24 = vpop.eup %2621 }
 0x139   :  { %v327_v31 = vsub.f32 1.0, %v2622_v24 }
 0x18b   :  { %v318_v25 = vpop.permute.xlu0 %317 }
 0x18c   :  { %v320_v26 = vmul.f32 %v2622_v24, %v318_v25 }
 0x18e   :  { %322 = vrot.lane.b32.xlu1 %v320_v26, %s2899_s0 }
 0x18f   :  { %v334_v30 = vpop.permute.xlu0 %333 }
 0x190   :  { %v336_v33 = vmul.f32 %v2622_v24, %v334_v30 }
 0x200   :  { %v323_v27 = vpop.permute.xlu1 %322 }
 0x201   :  { %v325_v28 = vadd.f32 %v323_v27, %v3070_v19 }
 0x203   :  { %2623 = vtanh.f32 %v325_v28 }
 0x210   :  { %v2624_v29 = vpop.eup %2623 }
 0x211   :  { %329 = vrot.lane.b32.xlu1 %v2624_v29, %s2900_s4 }
 0x283   :  { %v330_v32 = vpop.permute.xlu1 %329 }
 0x284   :  { %v332_v34 = vmul.f32 %v330_v32, %v327_v31 }
 0x286   :  { %v337_v35 = vadd.f32 %v336_v33, %v332_v34 }
 0x288   :  { %339 = vrot.lane.b32.xlu1 %v337_v35, %s2900_s4  ;;  %v445_v52 = vrot.slane %v337_v35, 6 }
 0x2fa   :  { %v340_v36 = vpop.permute.xlu1 %339 }
 0x2fb   :  { %343 = vst.msk [vmem:[#allocation2] sm:$0x3] %vm342_vm3, %v340_v36  ;;  %2425 = vmatmul.mubr.msk.f32.vlgmr.msra.gmra.mxu0 %vm231_vm2, %v340_v36 }
 0x2fc   :  { %2439 = vmatpush3.msra.mxu0 %v3012_v2  ;;  %2446 = vmatprep.mubr.msk.f32.mxu0 %vm2898_vm0, %v2897_v0 }
 0x2fd   :  { %2440 = vmatprep.subr.mxu0 %v2897_v0 }
 0x2fe   :  { %2441 = vmatpush3.msra.mxu0 %v3015_v4 }
 0x2ff   :  { %2442 = vmatprep.subr.mxu0 %v2897_v0 }
 0x300   :  { %2443 = vmatpush3.msra.mxu0 %v3025_v7 }
 0x301   :  { %2444 = vmatprep.subr.mxu0 %v2897_v0 }
 0x302   :  { %2445 = vmatpush3.msra.mxu0 %v3031_v9 }
 0x303   :  { %2460 = vmatprep.subr.mxu0 %v2897_v0 }
 0x3bb   :  { %v412_v37 = vpop.f32.mrf.mxu0 }
 0x3bc   :  { %v426_v38 = vadd.f32 %v412_v37, %v3065_v14  ;;  %v417_v41 = vrot.slane %v412_v37, 6 }
 0x3bd   :  { %v2426_v39 = vpop.f32.mrf.mxu0 }
 0x3be   :  { %v428_v40 = vrot.slane %v426_v38, 6  ;;  %v419_v42 = vadd.f32 %v417_v41, %v3070_v19 }
 0x3c0   :  { %429 = vrot.lane.b32.xlu0 %v428_v40, %s2899_s0  ;;  %v2266_v43 = vmul.f32 -1.442695, %v419_v42 }
 0x3c2   :  { %2625 = vpow2.f32 %v2266_v43 }
 0x3cf   :  { %v2626_v44 = vpop.eup %2625 }
 0x3d0   :  { %v423_v45 = vadd.f32 1.0, %v2626_v44 }
 0x3d2   :  { %2627 = vrcp.f32 %v423_v45 }
 0x3df   :  { %v2628_v46 = vpop.eup %2627 }
 0x3e0   :  { %v439_v53 = vsub.f32 1.0, %v2628_v46  ;;  %v447_v56 = vmul.f32 %v2628_v46, %v445_v52 }
 0x432   :  { %v430_v47 = vpop.permute.xlu0 %429 }
 0x433   :  { %v432_v48 = vmul.f32 %v2628_v46, %v430_v47 }
 0x435   :  { %434 = vrot.lane.b32.xlu1 %v432_v48, %s2899_s0 }
 0x4a7   :  { %v435_v49 = vpop.permute.xlu1 %434 }
 0x4a8   :  { %v437_v50 = vadd.f32 %v435_v49, %v3070_v19 }
 0x4aa   :  { %2629 = vtanh.f32 %v437_v50 }
 0x4b7   :  { %v2630_v51 = vpop.eup %2629 }
 0x4b8   :  { %441 = vrot.lane.b32.xlu0 %v2630_v51, %s2900_s4 }
 0x52a   :  { %v442_v54 = vpop.permute.xlu0 %441 }
 0x52b   :  { %v444_v55 = vmul.f32 %v442_v54, %v439_v53 }
 0x52d   :  { %v3095_v57 = vadd.f32 %v447_v56, %v444_v55 }
 0x52f   :  { %v455_v58 = vrot.slane %v3095_v57, 2  ;;  %v559_v20 = vrot.slane %v3095_v57, 6 }
 0x531   :  { %456 = vrot.lane.b32.xlu1 %v455_v58, %s2900_s4 }
 0x5a3   :  { %v457_v59 = vpop.permute.xlu1 %456 }
 0x5a4   :  { %2436 = vmatmul.mubr.msk.f32.vlgmr.msra.gmra.mxu1 %vm231_vm2, %v457_v59 }
 0x5a5   :  { %2450 = vmatpush3.msra.mxu1 %v3012_v2  ;;  %2457 = vmatprep.mubr.msk.f32.mxu1 %vm2898_vm0, %v2897_v0 }
 0x5a6   :  { %2451 = vmatprep.subr.mxu1 %v2897_v0 }
 0x5a7   :  { %2452 = vmatpush3.msra.mxu1 %v3015_v4 }
 0x5a8   :  { %2453 = vmatprep.subr.mxu1 %v2897_v0 }
 0x5a9   :  { %2454 = vmatpush3.msra.mxu1 %v3025_v7 }
 0x5aa   :  { %2455 = vmatprep.subr.mxu1 %v2897_v0 }
 0x5ab   :  { %2456 = vmatpush3.msra.mxu1 %v3031_v9 }
 0x5ac   :  { %2471 = vmatprep.subr.mxu1 %v2897_v0 }
 0x664   :  { %v526_v60 = vpop.f32.mrf.mxu1 }
 0x665   :  { %v540_v61 = vadd.f32 %v526_v60, %v3065_v14  ;;  %v531_v1 = vrot.slane %v526_v60, 4 }
 0x666   :  { %v2437_v62 = vpop.f32.mrf.mxu1 }
 0x667   :  { %v542_v63 = vrot.slane %v540_v61, 4  ;;  %v533_v3 = vadd.f32 %v531_v1, %v3070_v19 }
 0x669   :  { %543 = vrot.lane.b32.xlu0 %v542_v63, %s2899_s0  ;;  %v2268_v5 = vmul.f32 -1.442695, %v533_v3 }
 0x66b   :  { %2631 = vpow2.f32 %v2268_v5 }
 0x678   :  { %v2632_v6 = vpop.eup %2631 }
 0x679   :  { %v537_v8 = vadd.f32 1.0, %v2632_v6 }
 0x67b   :  { %2633 = vrcp.f32 %v537_v8 }
 0x688   :  { %v2634_v10 = vpop.eup %2633 }
 0x689   :  { %v553_v18 = vsub.f32 1.0, %v2634_v10  ;;  %v561_v22 = vmul.f32 %v2634_v10, %v559_v20 }
 0x6db   :  { %v544_v11 = vpop.permute.xlu0 %543 }
 0x6dc   :  { %v546_v12 = vmul.f32 %v2634_v10, %v544_v11 }
 0x6de   :  { %548 = vrot.lane.b32.xlu1 %v546_v12, %s2899_s0 }
 0x750   :  { %v549_v15 = vpop.permute.xlu1 %548 }
 0x751   :  { %v551_v16 = vadd.f32 %v549_v15, %v3070_v19 }
 0x753   :  { %2635 = vtanh.f32 %v551_v16 }
 0x760   :  { %v2636_v17 = vpop.eup %2635 }
 0x761   :  { %555 = vrot.lane.b32.xlu0 %v2636_v17, %s2900_s4 }
 0x7d3   :  { %v556_v21 = vpop.permute.xlu0 %555 }
 0x7d4   :  { %v558_v23 = vmul.f32 %v556_v21, %v553_v18 }
 0x7d6   :  { %v3117_v24 = vadd.f32 %v561_v22, %v558_v23 }
 0x7d8   :  { %v569_v25 = vrot.slane %v3117_v24, 4  ;;  %v673_v43 = vrot.slane %v3117_v24, 6 }
 0x7da   :  { %570 = vrot.lane.b32.xlu1 %v569_v25, %s2900_s4 }
 0x84c   :  { %v571_v26 = vpop.permute.xlu1 %570 }
 0x84d   :  { %2447 = vmatmul.mubr.msk.f32.vlgmr.msra.gmra.mxu0 %vm231_vm2, %v571_v26 }
 0x84e   :  { %2461 = vmatpush3.msra.mxu0 %v3012_v2  ;;  %2468 = vmatprep.mubr.msk.f32.mxu0 %vm2898_vm0, %v2897_v0 }
 0x84f   :  { %2462 = vmatprep.subr.mxu0 %v2897_v0 }
 0x850   :  { %2463 = vmatpush3.msra.mxu0 %v3015_v4 }
 0x851   :  { %2464 = vmatprep.subr.mxu0 %v2897_v0 }
 0x852   :  { %2465 = vmatpush3.msra.mxu0 %v3025_v7 }
 0x853   :  { %2466 = vmatprep.subr.mxu0 %v2897_v0 }
 0x854   :  { %2467 = vmatpush3.msra.mxu0 %v3031_v9 }
 0x855   :  { %2482 = vmatprep.subr.mxu0 %v2897_v0 }
 0x90d   :  { %v640_v27 = vpop.f32.mrf.mxu0 }
 0x90e   :  { %v654_v28 = vadd.f32 %v640_v27, %v3065_v14  ;;  %v645_v31 = vrot.slane %v640_v27, 2 }
 0x90f   :  { %v2448_v29 = vpop.f32.mrf.mxu0 }
 0x910   :  { %v656_v30 = vrot.slane %v654_v28, 2  ;;  %v647_v32 = vadd.f32 %v645_v31, %v3070_v19 }
 0x912   :  { %657 = vrot.lane.b32.xlu0 %v656_v30, %s2899_s0  ;;  %v2270_v33 = vmul.f32 -1.442695, %v647_v32 }
 0x914   :  { %2637 = vpow2.f32 %v2270_v33 }
 0x921   :  { %v2638_v34 = vpop.eup %2637 }
 0x922   :  { %v651_v35 = vadd.f32 1.0, %v2638_v34 }
 0x924   :  { %2639 = vrcp.f32 %v651_v35 }
 0x931   :  { %v2640_v36 = vpop.eup %2639 }
 0x932   :  { %v667_v42 = vsub.f32 1.0, %v2640_v36  ;;  %v675_v45 = vmul.f32 %v2640_v36, %v673_v43 }
 0x984   :  { %v658_v37 = vpop.permute.xlu0 %657 }
 0x985   :  { %v660_v38 = vmul.f32 %v2640_v36, %v658_v37 }
 0x987   :  { %662 = vrot.lane.b32.xlu1 %v660_v38, %s2899_s0 }
 0x9f9   :  { %v663_v39 = vpop.permute.xlu1 %662 }
 0x9fa   :  { %v665_v40 = vadd.f32 %v663_v39, %v3070_v19 }
 0x9fc   :  { %2641 = vtanh.f32 %v665_v40 }
 0xa09   :  { %v2642_v41 = vpop.eup %2641 }
 0xa0a   :  { %669 = vrot.lane.b32.xlu0 %v2642_v41, %s2900_s4 }
 0xa7c   :  { %v670_v44 = vpop.permute.xlu0 %669 }
 0xa7d   :  { %v672_v46 = vmul.f32 %v670_v44, %v667_v42 }
 0xa7f   :  { %v3139_v47 = vadd.f32 %v675_v45, %v672_v46 }
 0xa81   :  { %v683_v48 = vrot.slane %v3139_v47, 6 }
 0xa83   :  { %684 = vrot.lane.b32.xlu1 %v683_v48, %s2900_s4 }
 0xaf5   :  { %v685_v49 = vpop.permute.xlu1 %684 }
 0xaf6   :  { %2458 = vmatmul.mubr.msk.f32.vlgmr.msra.gmra.mxu1 %vm231_vm2, %v685_v49 }
 0xaf7   :  { %2472 = vmatpush3.msra.mxu1 %v3012_v2  ;;  %2479 = vmatprep.mubr.msk.f32.mxu1 %vm2898_vm0, %v2897_v0 }
 0xaf8   :  { %2473 = vmatprep.subr.mxu1 %v2897_v0 }
 0xaf9   :  { %2474 = vmatpush3.msra.mxu1 %v3015_v4 }
 0xafa   :  { %2475 = vmatprep.subr.mxu1 %v2897_v0 }
 0xafb   :  { %2476 = vmatpush3.msra.mxu1 %v3025_v7 }
 0xafc   :  { %2477 = vmatprep.subr.mxu1 %v2897_v0 }
 0xafd   :  { %2478 = vmatpush3.msra.mxu1 %v3031_v9 }
 0xbb6   :  { %v754_v19 = vpop.f32.mrf.mxu1 }
 0xbb7   :  { %v765_v50 = vadd.f32 %v754_v19, %v3065_v14  ;;  %v758_v52 = vadd.f32 %v754_v19, %v3063_v13 }
 0xbb8   :  { %v2459_v51 = vpop.f32.mrf.mxu1 }
 0xbb9   :  { %767 = vrot.lane.b32.xlu0 %v765_v50, %s2899_s0  ;;  %v2272_v53 = vmul.f32 -1.442695, %v758_v52 }
 0xbbb   :  { %2643 = vpow2.f32 %v2272_v53 }
 0xbc8   :  { %v2644_v54 = vpop.eup %2643 }
 0xbc9   :  { %v762_v55 = vadd.f32 1.0, %v2644_v54 }
 0xbcb   :  { %2645 = vrcp.f32 %v762_v55 }
 0xbd8   :  { %v2646_v56 = vpop.eup %2645 }
 0xbd9   :  { %v777_v63 = vsub.f32 1.0, %v2646_v56  ;;  %v784_v3 = vmul.f32 %v2646_v56, %v683_v48 }
 0xc2b   :  { %v768_v58 = vpop.permute.xlu0 %767 }
 0xc2c   :  { %v770_v59 = vmul.f32 %v2646_v56, %v768_v58 }
 0xc2e   :  { %772 = vrot.lane.b32.xlu1 %v770_v59, %s2899_s0 }
 0xca0   :  { %v773_v60 = vpop.permute.xlu1 %772 }
 0xca1   :  { %v775_v61 = vadd.f32 %v773_v60, %v3063_v13 }
 0xca3   :  { %2647 = vtanh.f32 %v775_v61 }
 0xcb0   :  { %v2648_v62 = vpop.eup %2647 }
 0xcb1   :  { %779 = vrot.lane.b32.xlu0 %v2648_v62, %s2900_s4 }
 0xd23   :  { %v780_v1 = vpop.permute.xlu0 %779 }
 0xd24   :  { %v782_v5 = vmul.f32 %v780_v1, %v777_v63 }
 0xd26   :  { %v785_v6 = vadd.f32 %v784_v3, %v782_v5 }
 0xd28   :  { %787 = vrot.lane.b32.xlu1 %v785_v6, %s2900_s4  ;;  %v892_v25 = vrot.slane %v785_v6, 6 }
 0xd9a   :  { %v788_v8 = vpop.permute.xlu1 %787 }
 0xd9b   :  { %790 = vst.msk [vmem:[#allocation2 + $0x8] sm:$0x3] %vm342_vm3, %v788_v8  ;;  %2469 = vmatmul.mubr.msk.f32.vlgmr.msra.gmra.mxu0 %vm231_vm2, %v788_v8 }
 0xd9c   :  { %2483 = vmatpush3.msra.mxu0 %v3012_v2  ;;  %2490 = vmatprep.mubr.msk.f32.mxu0 %vm2898_vm0, %v2897_v0 }
 0xd9d   :  { %2484 = vmatprep.subr.mxu0 %v2897_v0 }
 0xd9e   :  { %2485 = vmatpush3.msra.mxu0 %v3015_v4 }
 0xd9f   :  { %2486 = vmatprep.subr.mxu0 %v2897_v0 }
 0xda0   :  { %2487 = vmatpush3.msra.mxu0 %v3025_v7 }
 0xda1   :  { %2488 = vmatprep.subr.mxu0 %v2897_v0 }
 0xda2   :  { %2489 = vmatpush3.msra.mxu0 %v3031_v9 }
 0xda3   :  { %2504 = vmatprep.subr.mxu0 %v2897_v0 }
 0xe5b   :  { %v859_v10 = vpop.f32.mrf.mxu0 }
 0xe5c   :  { %v873_v2 = vadd.f32 %v859_v10, %v3065_v14  ;;  %v864_v15 = vrot.slane %v859_v10, 6 }
 0xe5d   :  { %v2470_v11 = vpop.f32.mrf.mxu0 }
 0xe5e   :  { %v875_v12 = vrot.slane %v873_v2, 6  ;;  %v866_v4 = vadd.f32 %v864_v15, %v3063_v13  ;;  %v3216_v15 = vld [vmem:[#allocation11 + $0x10] sm:$0xff] }
 0xe60   :  { %876 = vrot.lane.b32.xlu0 %v875_v12, %s2899_s0  ;;  %v2274_v16 = vmul.f32 -1.442695, %v866_v4  ;;  %v3214_v12 = vld [vmem:[#allocation11 + $0x18] sm:$0xff]  ;;  %v3225_v4 = vld [vmem:[#allocation11] sm:$0xff] }
 0xe62   :  { %2649 = vpow2.f32 %v2274_v16  ;;  %v3230_v16 = vld [vmem:[#allocation3 + $0x2] sm:$0x3] }
 0xe6f   :  { %v2650_v17 = vpop.eup %2649 }
 0xe70   :  { %v870_v7 = vadd.f32 1.0, %v2650_v17  ;;  %v1132_v17 = vld [vmem:[#allocation9 + $0x10] sm:$0xff] }
 0xe72   :  { %2651 = vrcp.f32 %v870_v7  ;;  %v1131_v7 = vld [vmem:[#allocation9 + $0x8] sm:$0xff] }
 0xe7f   :  { %v2652_v18 = vpop.eup %2651 }
 0xe80   :  { %v886_v26 = vsub.f32 1.0, %v2652_v18  ;;  %v894_v29 = vmul.f32 %v2652_v18, %v892_v25 }
 0xed2   :  { %v877_v20 = vpop.permute.xlu0 %876 }
 0xed3   :  { %v879_v9 = vmul.f32 %v2652_v18, %v877_v20  ;;  %v2282_v18 = vld [vmem:[%s3455_s9] ss:$0 sm:$0xff]  ;;  %v1130_v20 = vld [vmem:[#allocation9] sm:$0xff] }
 0xed5   :  { %881 = vrot.lane.b32.xlu1 %v879_v9, %s2899_s0 }
 0xf47   :  { %v882_v21 = vpop.permute.xlu1 %881 }
 0xf48   :  { %v884_v22 = vadd.f32 %v882_v21, %v3063_v13 }
 0xf4a   :  { %2653 = vtanh.f32 %v884_v22 }
 0xf57   :  { %v2654_v23 = vpop.eup %2653 }
 0xf58   :  { %888 = vrot.lane.b32.xlu0 %v2654_v23, %s2900_s4 }
 0xfca   :  { %v889_v27 = vpop.permute.xlu0 %888 }
 0xfcb   :  { %v891_v28 = vmul.f32 %v889_v27, %v886_v26 }
 0xfcd   :  { %v3178_v30 = vadd.f32 %v894_v29, %v891_v28 }
 0xfcf   :  { %v901_v31 = vrot.slane %v3178_v30, 2  ;;  %v1005_v19 = vrot.slane %v3178_v30, 6 }
 0xfd1   :  { %902 = vrot.lane.b32.xlu1 %v901_v31, %s2900_s4 }
0x1043   :  { %v903_v32 = vpop.permute.xlu1 %902 }
0x1044   :  { %2480 = vmatmul.mubr.msk.f32.vlgmr.msra.gmra.mxu1 %vm231_vm2, %v903_v32 }
0x1104   :  { %v972_v33 = vpop.f32.mrf.mxu1 }
0x1105   :  { %v986_v34 = vadd.f32 %v972_v33, %v3065_v14  ;;  %v977_v37 = vrot.slane %v972_v33, 4 }
0x1106   :  { %v2481_v35 = vpop.f32.mrf.mxu1 }
0x1107   :  { %v988_v36 = vrot.slane %v986_v34, 4  ;;  %v979_v38 = vadd.f32 %v977_v37, %v3063_v13 }
0x1109   :  { %989 = vrot.lane.b32.xlu0 %v988_v36, %s2899_s0  ;;  %v2276_v39 = vmul.f32 -1.442695, %v979_v38  ;;  %v2279_v36 = vld [vmem:[%s3454_s8] ss:$0 sm:$0xff]  ;;  %s2901_s8 = smov [#allocation15]  }
0x110a   :  { %s2240_s16 = sshll.u32 %s2901_s8, 4  ;;  %s2241_s16 = int_to_ptr.vmem [resolvable:$true] %s2240_s16 }
0x110b   :  { %2655 = vpow2.f32 %v2276_v39  ;;  %s2835_s1 = scalar_lea.vmem %s2241_s16, 64  ;;  %p2840_p3 = scmp.lt.s32.totalorder %s2241_s16, %s2241_s16 }
0x110c   :  { %p2836_p2 = scmp.ne.s32.totalorder %s2241_s16, %s2835_s1  ;;  %p2841_p4 = scmp.lt.s32.totalorder %s2835_s1, %s2835_s1 }
0x110e   :  { %p2842_p5 = por %p2841_p4, %p2840_p3 }
0x1110   :  { %p2843_p6 = pnand %p2842_p5, %p2836_p2 }
0x1118   :  { %v2656_v40 = vpop.eup %2655 }
0x1119   :  { %v983_v41 = vadd.f32 1.0, %v2656_v40 }
0x111b   :  { %2657 = vrcp.f32 %v983_v41 }
0x1128   :  { %v2658_v42 = vpop.eup %2657 }
0x1129   :  { %v999_v49 = vsub.f32 1.0, %v2658_v42  ;;  %v1007_v51 = vmul.f32 %v2658_v42, %v1005_v19 }
0x117b   :  { %v990_v43 = vpop.permute.xlu0 %989 }
0x117c   :  { %v992_v44 = vmul.f32 %v2658_v42, %v990_v43 }
0x117e   :  { %994 = vrot.lane.b32.xlu1 %v992_v44, %s2899_s0 }
0x11f0   :  { %v995_v45 = vpop.permute.xlu1 %994 }
0x11f1   :  { %v997_v46 = vadd.f32 %v995_v45, %v3063_v13 }
0x11f3   :  { %2659 = vtanh.f32 %v997_v46 }
0x1200   :  { %v2660_v48 = vpop.eup %2659 }
0x1201   :  { %1001 = vrot.lane.b32.xlu0 %v2660_v48, %s2900_s4 }
0x1273   :  { %v1002_v50 = vpop.permute.xlu0 %1001 }
0x1274   :  { %v1004_v52 = vmul.f32 %v1002_v50, %v999_v49 }
0x1276   :  { %v3190_v53 = vadd.f32 %v1007_v51, %v1004_v52 }
0x1278   :  { %v1014_v54 = vrot.slane %v3190_v53, 4  ;;  %v1118_v21 = vrot.slane %v3190_v53, 6 }
0x127a   :  { %1015 = vrot.lane.b32.xlu1 %v1014_v54, %s2900_s4 }
0x12ec   :  { %v1016_v55 = vpop.permute.xlu1 %1015 }
0x12ed   :  { %2491 = vmatmul.mubr.msk.f32.vlgmr.msra.gmra.mxu0 %vm231_vm2, %v1016_v55 }
0x12ee   :  { %2512 = vmatprep.mubr.msk.f32.mxu0 %vm2898_vm0, %v2897_v0  ;;  %2505 = vmatpush3.msra.mxu0 %v3214_v12 }
0x12ef   :  { %2506 = vmatprep.subr.mxu0 %v2897_v0 }
0x12f0   :  { %2507 = vmatpush3.msra.mxu0 %v3216_v15 }
0x12f1   :  { %2508 = vmatprep.subr.mxu0 %v2897_v0 }
0x13ad   :  { %v1085_v56 = vpop.f32.mrf.mxu0 }
0x13ae   :  { %v1099_v58 = vadd.f32 %v1085_v56, %v3065_v14  ;;  %v1090_v61 = vrot.slane %v1085_v56, 2 }
0x13af   :  { %v2492_v59 = vpop.f32.mrf.mxu0 }
0x13b0   :  { %v1101_v60 = vrot.slane %v1099_v58, 2  ;;  %v1092_v62 = vadd.f32 %v1090_v61, %v3063_v13 }
0x13b2   :  { %1102 = vrot.lane.b32.xlu0 %v1101_v60, %s2899_s0  ;;  %v2278_v63 = vmul.f32 -1.442695, %v1092_v62 }
0x13b4   :  { %2661 = vpow2.f32 %v2278_v63 }
0x13c1   :  { %v2662_v1 = vpop.eup %2661 }
0x13c2   :  { %v1096_v3 = vadd.f32 1.0, %v2662_v1 }
0x13c4   :  { %2663 = vrcp.f32 %v1096_v3 }
0x13d1   :  { %v3200_v5 = vpop.eup %2663 }
0x13d2   :  { %v1112_v9 = vsub.f32 1.0, %v3200_v5  ;;  %v1120_v23 = vmul.f32 %v3200_v5, %v1118_v21 }
0x1424   :  { %v1103_v6 = vpop.permute.xlu0 %1102 }
0x1425   :  { %v1105_v8 = vmul.f32 %v3200_v5, %v1103_v6 }
0x1427   :  { %1107 = vrot.lane.b32.xlu1 %v1105_v8, %s2899_s0 }
0x142b   :  { %450 = vrot.lane.b32.xlu1 %v3095_v57, %s2900_s4 }
0x142f   :  { %678 = vrot.lane.b32.xlu1 %v3139_v47, %s2900_s4 }
0x1433   :  { %1010 = vrot.lane.b32.xlu1 %v3190_v53, %s2900_s4 }
0x1437   :  { %1314 = vrot.lane.b32.xlu1 %v2282_v18, %s2899_s0 }
0x1499   :  { %v1108_v14 = vpop.permute.xlu1 %1107 }
0x149a   :  { %v1110_v10 = vadd.f32 %v1108_v14, %v3063_v13  ;;  %v3221_v13 = vld [vmem:[#allocation11 + $0x8] sm:$0xff] }
0x149b   :  { %2509 = vmatpush3.msra.mxu0 %v3221_v13 }
0x149c   :  { %2665 = vtanh.f32 %v1110_v10  ;;  %2510 = vmatprep.subr.mxu0 %v2897_v0 }
0x149d   :  { %v451_v2 = vpop.permute.xlu1 %450  ;;  %2511 = vmatpush3.msra.mxu0 %v3225_v4 }
0x149e   :  { %454 = vst.msk [vmem:[#allocation2] sm:$0xc] %vm453_vm4, %v451_v2  ;;  %2513 = vmatmul.mubr.msk.f32.vlgmr.msra.gmra.mxu0 %vm231_vm2, %v3230_v16  ;;  %2526 = vmatprep.subr.mxu0 %v2897_v0 }
0x149f   :  { %2527 = vmatpush3.msra.mxu0 %v3214_v12  ;;  %2534 = vmatprep.mubr.msk.f32.mxu0 %vm2898_vm0, %v2897_v0 }
0x14a0   :  { %2528 = vmatprep.subr.mxu0 %v2897_v0 }
0x14a1   :  { %v679_v11 = vpop.permute.xlu1 %678  ;;  %2529 = vmatpush3.msra.mxu0 %v3216_v15 }
0x14a2   :  { %682 = vst.msk [vmem:[#allocation2] sm:$0xc0] %vm681_vm5, %v679_v11  ;;  %2530 = vmatprep.subr.mxu0 %v2897_v0 }
0x14a3   :  { %2531 = vmatpush3.msra.mxu0 %v3221_v13 }
0x14a4   :  { %2532 = vmatprep.subr.mxu0 %v2897_v0 }
0x14a5   :  { %v1011_v57 = vpop.permute.xlu1 %1010  ;;  %2533 = vmatpush3.msra.mxu0 %v3225_v4 }
0x14a6   :  { %1013 = vst.msk [vmem:[#allocation2 + $0x8] sm:$0x30] %vm567_vm6, %v1011_v57  ;;  %2548 = vmatprep.subr.mxu0 %v2897_v0 }
0x14a9   :  { %v2666_v47 = vpop.eup %2665  ;;  %v3261_v32 = vpop.permute.xlu1 %1314 }
0x14aa   :  { %1114 = vrot.lane.b32.xlu0 %v2666_v47, %s2900_s4 }
0x14ae   :  { %564 = vrot.lane.b32.xlu0 %v3117_v24, %s2900_s4  ;;  %v1133_v24 = vld [vmem:[#allocation9 + $0x18] sm:$0xff] }
0x14af   :  { %2493 = vmatprep.subr.mxu1 %v1133_v24 }
0x14b0   :  { %2494 = vmatpush3.msra.mxu1 %v1133_v24 }
0x14b1   :  { %2495 = vmatprep.subr.mxu1 %v1132_v17 }
0x14b2   :  { %897 = vrot.lane.b32.xlu0 %v3178_v30, %s2900_s4  ;;  %2496 = vmatpush3.msra.mxu1 %v1132_v17 }
0x14b3   :  { %2497 = vmatprep.subr.mxu1 %v1131_v7 }
0x14b4   :  { %2498 = vmatpush3.msra.mxu1 %v1131_v7 }
0x14b5   :  { %2499 = vmatprep.subr.mxu1 %v1130_v20 }
0x14b6   :  { %2500 = vmatpush3.msra.mxu1 %v1130_v20 }
0x14b7   :  { %2515 = vmatprep.subr.mxu1 %v2897_v0 }
0x151c   :  { %v1115_v22 = vpop.permute.xlu0 %1114 }
0x151d   :  { %v1117_v25 = vmul.f32 %v1115_v22, %v1112_v9 }
0x151f   :  { %v1121_v26 = vadd.f32 %v1120_v23, %v1117_v25 }
0x1520   :  { %v565_v27 = vpop.permute.xlu0 %564 }
0x1521   :  { %568 = vst.msk [vmem:[#allocation2] sm:$0x30] %vm567_vm6, %v565_v27  ;;  %1123 = vrot.lane.b32.xlu0 %v1121_v26, %s2900_s4 }
0x1524   :  { %v898_v28 = vpop.permute.xlu0 %897 }
0x1525   :  { %900 = vst.msk [vmem:[#allocation2 + $0x8] sm:$0xc] %vm453_vm4, %v898_v28 }
0x1528   :  { %v1128_v29 = vld [vmem:[#allocation2] sm:$0xff] }
0x1529   :  { %2501 = vmatprep.mubr.msk.f32.mxu1 %vm231_vm2, %v1128_v29 }
0x155e   :  { %v1303_v30 = vpop.f32.mrf.mxu0 }
0x155f   :  { %v1317_v33 = vadd.f32 %v3261_v32, %v1303_v30 }
0x1560   :  { %v2514_v31 = vpop.f32.mrf.mxu0 }
0x1561   :  { %1319 = vrot.lane.b32.xlu0 %v1317_v33, %s2899_s0 }
0x1593   :  { %v1124_v34 = vpop.permute.xlu0 %1123 }
0x1594   :  { %1126 = vst.msk [vmem:[#allocation2 + $0x8] sm:$0xc0] %vm681_vm5, %v1124_v34  ;;  %1127 = vst.msk [vmem:[#allocation15 - $0x6] sm:$0xc0] %vm681_vm5, %v1124_v34 }
0x159b   :  { %v1129_v35 = vld [vmem:[#allocation2 + $0x8] sm:$0xff] }
0x159c   :  { %2502 = vmatmul.mubr.msk.f32.vlgmr.msra.gmra.mxu1 %vm231_vm2, %v1129_v35 }
0x159d   :  { %2516 = vmatpush3.msra.mxu1 %v3214_v12  ;;  %2523 = vmatprep.mubr.msk.f32.mxu1 %vm2898_vm0, %v2897_v0 }
0x159e   :  { %2517 = vmatprep.subr.mxu1 %v2897_v0 }
0x159f   :  { %2518 = vmatpush3.msra.mxu1 %v3216_v15 }
0x15a0   :  { %2519 = vmatprep.subr.mxu1 %v2897_v0 }
0x15a1   :  { %2520 = vmatpush3.msra.mxu1 %v3221_v13 }
0x15a2   :  { %2521 = vmatprep.subr.mxu1 %v2897_v0 }
0x15a3   :  { %2522 = vmatpush3.msra.mxu1 %v3225_v4 }
0x15a4   :  { %2537 = vmatprep.subr.mxu1 %v2897_v0 }
0x15d3   :  { %v1320_v45 = vpop.permute.xlu0 %1319 }
0x165c   :  { %v2503_v37 = vpop.f32.mrf.mxu1 }
0x165d   :  { %v3281_v38 = vadd.f32 %v2503_v37, %v2279_v36 }
0x165e   :  { %v1213_v39 = vpop.f32.mrf.mxu1 }
0x165f   :  { %v3283_v40 = vadd.f32 %v2279_v36, %v1213_v39 }
0x1661   :  { %v1307_v41 = vadd.f32 %v1303_v30, %v3283_v40 }
0x1663   :  { %v2284_v42 = vmul.f32 -1.442695, %v1307_v41 }
0x1665   :  { %2667 = vpow2.f32 %v2284_v42 }
0x1672   :  { %v2668_v43 = vpop.eup %2667 }
0x1673   :  { %v1311_v44 = vadd.f32 1.0, %v2668_v43 }
0x1675   :  { %2669 = vrcp.f32 %v1311_v44 }
0x1682   :  { %v2670_v46 = vpop.eup %2669 }
0x1683   :  { %v1322_v48 = vmul.f32 %v2670_v46, %v1320_v45  ;;  %v1329_v52 = vsub.f32 1.0, %v2670_v46 }
0x1685   :  { %1324 = vrot.lane.b32.xlu1 %v1322_v48, %s2899_s0 }
0x1689   :  { %1335 = vrot.lane.b32.xlu1 %v3230_v16, %s2892_s22 }
0x16f7   :  { %v1325_v49 = vpop.permute.xlu1 %1324 }
0x16f8   :  { %v1327_v19 = vadd.f32 %v1325_v49, %v3283_v40 }
0x16fa   :  { %2671 = vtanh.f32 %v1327_v19 }
0x16fb   :  { %v1336_v51 = vpop.permute.xlu1 %1335 }
0x16fc   :  { %v1338_v54 = vmul.f32 %v2670_v46, %v1336_v51 }
0x1707   :  { %v2672_v50 = vpop.eup %2671 }
0x1708   :  { %1331 = vrot.lane.b32.xlu0 %v2672_v50, %s2900_s4 }
0x177a   :  { %v1332_v53 = vpop.permute.xlu0 %1331 }
0x177b   :  { %v1334_v55 = vmul.f32 %v1332_v53, %v1329_v52 }
0x177d   :  { %v1339_v56 = vadd.f32 %v1338_v54, %v1334_v55 }
0x177f   :  { %1341 = vrot.lane.b32.xlu0 %v1339_v56, %s2900_s4  ;;  %v1446_v47 = vrot.slane %v1339_v56, 6 }
0x17f1   :  { %v1342_v58 = vpop.permute.xlu0 %1341 }
0x17f2   :  { %1344 = vst.msk [vmem:[#allocation2] sm:$0x3] %vm342_vm3, %v1342_v58  ;;  %2524 = vmatmul.mubr.msk.f32.vlgmr.msra.gmra.mxu1 %vm231_vm2, %v1342_v58 }
0x17f3   :  { %2538 = vmatpush3.msra.mxu1 %v3214_v12  ;;  %2545 = vmatprep.mubr.msk.f32.mxu1 %vm2898_vm0, %v2897_v0 }
0x17f4   :  { %2539 = vmatprep.subr.mxu1 %v2897_v0 }
0x17f5   :  { %2540 = vmatpush3.msra.mxu1 %v3216_v15 }
0x17f6   :  { %2541 = vmatprep.subr.mxu1 %v2897_v0 }
0x17f7   :  { %2542 = vmatpush3.msra.mxu1 %v3221_v13 }
0x17f8   :  { %2543 = vmatprep.subr.mxu1 %v2897_v0 }
0x17f9   :  { %2544 = vmatpush3.msra.mxu1 %v3225_v4 }
0x17fa   :  { %2559 = vmatprep.subr.mxu1 %v2897_v0 }
0x18b2   :  { %v1413_v59 = vpop.f32.mrf.mxu1 }
0x18b3   :  { %v1427_v60 = vadd.f32 %v1413_v59, %v3261_v32  ;;  %v1418_v63 = vrot.slane %v1413_v59, 6 }
0x18b4   :  { %v2525_v61 = vpop.f32.mrf.mxu1 }
0x18b5   :  { %v1429_v62 = vrot.slane %v1427_v60, 6  ;;  %v1420_v1 = vadd.f32 %v1418_v63, %v3283_v40 }
0x18b7   :  { %1430 = vrot.lane.b32.xlu1 %v1429_v62, %s2899_s0  ;;  %v2286_v3 = vmul.f32 -1.442695, %v1420_v1 }
0x18b9   :  { %2673 = vpow2.f32 %v2286_v3 }
0x18c6   :  { %v2674_v5 = vpop.eup %2673 }
0x18c7   :  { %v1424_v6 = vadd.f32 1.0, %v2674_v5 }
0x18c9   :  { %2675 = vrcp.f32 %v1424_v6 }
0x18d6   :  { %v2676_v8 = vpop.eup %2675 }
0x18d7   :  { %v1440_v16 = vsub.f32 1.0, %v2676_v8  ;;  %v1448_v7 = vmul.f32 %v2676_v8, %v1446_v47 }
0x1929   :  { %v1431_v14 = vpop.permute.xlu1 %1430 }
0x192a   :  { %v1433_v10 = vmul.f32 %v2676_v8, %v1431_v14 }
0x192c   :  { %1435 = vrot.lane.b32.xlu0 %v1433_v10, %s2899_s0 }
0x199e   :  { %v1436_v2 = vpop.permute.xlu0 %1435 }
0x199f   :  { %v1438_v11 = vadd.f32 %v1436_v2, %v3283_v40 }
0x19a1   :  { %2677 = vtanh.f32 %v1438_v11 }
0x19ae   :  { %v2678_v57 = vpop.eup %2677 }
0x19af   :  { %1442 = vrot.lane.b32.xlu1 %v2678_v57, %s2900_s4 }
0x1a21   :  { %v1443_v24 = vpop.permute.xlu1 %1442 }
0x1a22   :  { %v1445_v17 = vmul.f32 %v1443_v24, %v1440_v16 }
0x1a24   :  { %v3310_v18 = vadd.f32 %v1448_v7, %v1445_v17 }
0x1a26   :  { %v1455_v20 = vrot.slane %v3310_v18, 2  ;;  %v1559_v41 = vrot.slane %v3310_v18, 6 }
0x1a28   :  { %1456 = vrot.lane.b32.xlu0 %v1455_v20, %s2900_s4 }
0x1a9a   :  { %v1457_v9 = vpop.permute.xlu0 %1456 }
0x1a9b   :  { %2535 = vmatmul.mubr.msk.f32.vlgmr.msra.gmra.mxu0 %vm231_vm2, %v1457_v9 }
0x1a9c   :  { %2549 = vmatpush3.msra.mxu0 %v3214_v12  ;;  %2556 = vmatprep.mubr.msk.f32.mxu0 %vm2898_vm0, %v2897_v0 }
0x1a9d   :  { %2550 = vmatprep.subr.mxu0 %v2897_v0 }
0x1a9e   :  { %2551 = vmatpush3.msra.mxu0 %v3216_v15 }
0x1a9f   :  { %2552 = vmatprep.subr.mxu0 %v2897_v0 }
0x1aa0   :  { %2553 = vmatpush3.msra.mxu0 %v3221_v13 }
0x1aa1   :  { %2554 = vmatprep.subr.mxu0 %v2897_v0 }
0x1aa2   :  { %2555 = vmatpush3.msra.mxu0 %v3225_v4 }
0x1aa3   :  { %2570 = vmatprep.subr.mxu0 %v2897_v0 }
0x1b5b   :  { %v1526_v21 = vpop.f32.mrf.mxu0 }
0x1b5c   :  { %v1540_v22 = vadd.f32 %v1526_v21, %v3261_v32  ;;  %v1531_v26 = vrot.slane %v1526_v21, 4 }
0x1b5d   :  { %v2536_v23 = vpop.f32.mrf.mxu0 }
0x1b5e   :  { %v1542_v25 = vrot.slane %v1540_v22, 4  ;;  %v1533_v27 = vadd.f32 %v1531_v26, %v3283_v40 }
0x1b60   :  { %1543 = vrot.lane.b32.xlu1 %v1542_v25, %s2899_s0  ;;  %v2288_v28 = vmul.f32 -1.442695, %v1533_v27 }
0x1b62   :  { %2679 = vpow2.f32 %v2288_v28 }
0x1b6f   :  { %v2680_v29 = vpop.eup %2679 }
0x1b70   :  { %v1537_v30 = vadd.f32 1.0, %v2680_v29 }
0x1b72   :  { %2681 = vrcp.f32 %v1537_v30 }
0x1b7f   :  { %v2682_v31 = vpop.eup %2681 }
0x1b80   :  { %v1553_v39 = vsub.f32 1.0, %v2682_v31  ;;  %v1561_v43 = vmul.f32 %v2682_v31, %v1559_v41 }
0x1bd2   :  { %v1544_v33 = vpop.permute.xlu1 %1543 }
0x1bd3   :  { %v1546_v34 = vmul.f32 %v2682_v31, %v1544_v33 }
0x1bd5   :  { %1548 = vrot.lane.b32.xlu0 %v1546_v34, %s2899_s0 }
0x1c47   :  { %v1549_v35 = vpop.permute.xlu0 %1548 }
0x1c48   :  { %v1551_v36 = vadd.f32 %v1549_v35, %v3283_v40 }
0x1c4a   :  { %2683 = vtanh.f32 %v1551_v36 }
0x1c57   :  { %v2684_v37 = vpop.eup %2683 }
0x1c58   :  { %1555 = vrot.lane.b32.xlu1 %v2684_v37, %s2900_s4 }
0x1cca   :  { %v1556_v42 = vpop.permute.xlu1 %1555 }
0x1ccb   :  { %v1558_v44 = vmul.f32 %v1556_v42, %v1553_v39 }
0x1ccd   :  { %v3332_v45 = vadd.f32 %v1561_v43, %v1558_v44 }
0x1ccf   :  { %v1568_v46 = vrot.slane %v3332_v45, 4  ;;  %v1672_v3 = vrot.slane %v3332_v45, 6 }
0x1cd1   :  { %1569 = vrot.lane.b32.xlu0 %v1568_v46, %s2900_s4 }
0x1d43   :  { %v1570_v48 = vpop.permute.xlu0 %1569 }
0x1d44   :  { %2546 = vmatmul.mubr.msk.f32.vlgmr.msra.gmra.mxu1 %vm231_vm2, %v1570_v48 }
0x1d45   :  { %2560 = vmatpush3.msra.mxu1 %v3214_v12  ;;  %2567 = vmatprep.mubr.msk.f32.mxu1 %vm2898_vm0, %v2897_v0 }
0x1d46   :  { %2561 = vmatprep.subr.mxu1 %v2897_v0 }
0x1d47   :  { %2562 = vmatpush3.msra.mxu1 %v3216_v15 }
0x1d48   :  { %2563 = vmatprep.subr.mxu1 %v2897_v0 }
0x1d49   :  { %2564 = vmatpush3.msra.mxu1 %v3221_v13 }
0x1d4a   :  { %2565 = vmatprep.subr.mxu1 %v2897_v0 }
0x1d4b   :  { %2566 = vmatpush3.msra.mxu1 %v3225_v4 }
0x1d4c   :  { %2581 = vmatprep.subr.mxu1 %v2897_v0 }
0x1e04   :  { %v1639_v49 = vpop.f32.mrf.mxu1 }
0x1e05   :  { %v1653_v19 = vadd.f32 %v1639_v49, %v3261_v32  ;;  %v1644_v52 = vrot.slane %v1639_v49, 2 }
0x1e06   :  { %v2547_v50 = vpop.f32.mrf.mxu1 }
0x1e07   :  { %v1655_v51 = vrot.slane %v1653_v19, 2  ;;  %v1646_v53 = vadd.f32 %v1644_v52, %v3283_v40 }
0x1e09   :  { %1656 = vrot.lane.b32.xlu1 %v1655_v51, %s2899_s0  ;;  %v2290_v54 = vmul.f32 -1.442695, %v1646_v53 }
0x1e0b   :  { %2685 = vpow2.f32 %v2290_v54 }
0x1e18   :  { %v2686_v55 = vpop.eup %2685 }
0x1e19   :  { %v1650_v56 = vadd.f32 1.0, %v2686_v55 }
0x1e1b   :  { %2687 = vrcp.f32 %v1650_v56 }
0x1e28   :  { %v2688_v58 = vpop.eup %2687 }
0x1e29   :  { %v1666_v1 = vsub.f32 1.0, %v2688_v58  ;;  %v1674_v6 = vmul.f32 %v2688_v58, %v1672_v3 }
0x1e7b   :  { %v1657_v59 = vpop.permute.xlu1 %1656 }
0x1e7c   :  { %v1659_v60 = vmul.f32 %v2688_v58, %v1657_v59 }
0x1e7e   :  { %1661 = vrot.lane.b32.xlu0 %v1659_v60, %s2899_s0 }
0x1ef0   :  { %v1662_v61 = vpop.permute.xlu0 %1661 }
0x1ef1   :  { %v1664_v62 = vadd.f32 %v1662_v61, %v3283_v40 }
0x1ef3   :  { %2689 = vtanh.f32 %v1664_v62 }
0x1f00   :  { %v2690_v63 = vpop.eup %2689 }
0x1f01   :  { %1668 = vrot.lane.b32.xlu1 %v2690_v63, %s2900_s4 }
0x1f73   :  { %v1669_v5 = vpop.permute.xlu1 %1668 }
0x1f74   :  { %v1671_v8 = vmul.f32 %v1669_v5, %v1666_v1 }
0x1f76   :  { %v3354_v14 = vadd.f32 %v1674_v6, %v1671_v8 }
0x1f78   :  { %v1681_v10 = vrot.slane %v3354_v14, 6 }
0x1f7a   :  { %1682 = vrot.lane.b32.xlu0 %v1681_v10, %s2900_s4 }
0x1fec   :  { %v1683_v2 = vpop.permute.xlu0 %1682 }
0x1fed   :  { %2557 = vmatmul.mubr.msk.f32.vlgmr.msra.gmra.mxu0 %vm231_vm2, %v1683_v2 }
0x1fee   :  { %2571 = vmatpush3.msra.mxu0 %v3214_v12  ;;  %2578 = vmatprep.mubr.msk.f32.mxu0 %vm2898_vm0, %v2897_v0 }
0x1fef   :  { %2572 = vmatprep.subr.mxu0 %v2897_v0 }
0x1ff0   :  { %2573 = vmatpush3.msra.mxu0 %v3216_v15 }
0x1ff1   :  { %2574 = vmatprep.subr.mxu0 %v2897_v0 }
0x1ff2   :  { %2575 = vmatpush3.msra.mxu0 %v3221_v13 }
0x1ff3   :  { %2576 = vmatprep.subr.mxu0 %v2897_v0 }
0x1ff4   :  { %2577 = vmatpush3.msra.mxu0 %v3225_v4 }
0x20ad   :  { %v1752_v40 = vpop.f32.mrf.mxu0 }
0x20ae   :  { %v1763_v11 = vadd.f32 %v1752_v40, %v3261_v32  ;;  %v1756_v47 = vadd.f32 %v1752_v40, %v3281_v38 }
0x20af   :  { %v2558_v57 = vpop.f32.mrf.mxu0 }
0x20b0   :  { %1765 = vrot.lane.b32.xlu1 %v1763_v11, %s2899_s0  ;;  %v2292_v16 = vmul.f32 -1.442695, %v1756_v47 }
0x20b2   :  { %2691 = vpow2.f32 %v2292_v16 }
0x20bf   :  { %v2692_v24 = vpop.eup %2691 }
0x20c0   :  { %v1760_v17 = vadd.f32 1.0, %v2692_v24 }
0x20c2   :  { %2693 = vrcp.f32 %v1760_v17 }
0x20cf   :  { %v2694_v7 = vpop.eup %2693 }
0x20d0   :  { %v1775_v25 = vsub.f32 1.0, %v2694_v7  ;;  %v1782_v27 = vmul.f32 %v2694_v7, %v1681_v10 }
0x2122   :  { %v1766_v20 = vpop.permute.xlu1 %1765 }
0x2123   :  { %v1768_v9 = vmul.f32 %v2694_v7, %v1766_v20 }
0x2125   :  { %1770 = vrot.lane.b32.xlu0 %v1768_v9, %s2899_s0 }
0x2197   :  { %v1771_v21 = vpop.permute.xlu0 %1770 }
0x2198   :  { %v1773_v22 = vadd.f32 %v1771_v21, %v3281_v38 }
0x219a   :  { %2695 = vtanh.f32 %v1773_v22 }
0x21a7   :  { %v2696_v23 = vpop.eup %2695 }
0x21a8   :  { %1777 = vrot.lane.b32.xlu1 %v2696_v23, %s2900_s4 }
0x221a   :  { %v1778_v26 = vpop.permute.xlu1 %1777 }
0x221b   :  { %v1780_v28 = vmul.f32 %v1778_v26, %v1775_v25 }
0x221d   :  { %v1783_v29 = vadd.f32 %v1782_v27, %v1780_v28 }
0x221f   :  { %1785 = vrot.lane.b32.xlu0 %v1783_v29, %s2900_s4  ;;  %v1890_v44 = vrot.slane %v1783_v29, 6 }
0x2291   :  { %v1786_v30 = vpop.permute.xlu0 %1785 }
0x2292   :  { %1788 = vst.msk [vmem:[#allocation2 + $0x8] sm:$0x3] %vm342_vm3, %v1786_v30  ;;  %2568 = vmatmul.mubr.msk.f32.vlgmr.msra.gmra.mxu1 %vm231_vm2, %v1786_v30 }
0x2293   :  { %2582 = vmatpush3.msra.mxu1 %v3214_v12  ;;  %2589 = vmatprep.mubr.msk.f32.mxu1 %vm2898_vm0, %v2897_v0 }
0x2294   :  { %2583 = vmatprep.subr.mxu1 %v2897_v0 }
0x2295   :  { %2584 = vmatpush3.msra.mxu1 %v3216_v15 }
0x2296   :  { %2585 = vmatprep.subr.mxu1 %v2897_v0 }
0x2297   :  { %2586 = vmatpush3.msra.mxu1 %v3221_v13 }
0x2298   :  { %2587 = vmatprep.subr.mxu1 %v2897_v0 }
0x2299   :  { %2588 = vmatpush3.msra.mxu1 %v3225_v4 }
0x2352   :  { %v1857_v31 = vpop.f32.mrf.mxu1 }
0x2353   :  { %v1871_v33 = vadd.f32 %v1857_v31, %v3261_v32  ;;  %v1862_v35 = vrot.slane %v1857_v31, 6 }
0x2354   :  { %v2569_v34 = vpop.f32.mrf.mxu1 }
0x2355   :  { %v1873_v12 = vrot.slane %v1871_v33, 6  ;;  %v1864_v36 = vadd.f32 %v1862_v35, %v3281_v38  ;;  %v2129_v35 = vld [vmem:[#allocation12] sm:$0xff] }
0x2357   :  { %1874 = vrot.lane.b32.xlu1 %v1873_v12, %s2899_s0  ;;  %v2294_v37 = vmul.f32 -1.442695, %v1864_v36 }
0x2359   :  { %2697 = vpow2.f32 %v2294_v37 }
0x2366   :  { %v2698_v15 = vpop.eup %2697 }
0x2367   :  { %v1868_v39 = vadd.f32 1.0, %v2698_v15 }
0x2369   :  { %2699 = vrcp.f32 %v1868_v39 }
0x2376   :  { %v2700_v13 = vpop.eup %2699 }
0x2377   :  { %v1884_v46 = vsub.f32 1.0, %v2700_v13  ;;  %v1892_v19 = vmul.f32 %v2700_v13, %v1890_v44 }
0x23c9   :  { %v1875_v41 = vpop.permute.xlu1 %1874 }
0x23ca   :  { %v1877_v0 = vmul.f32 %v2700_v13, %v1875_v41 }
0x23cc   :  { %1879 = vrot.lane.b32.xlu0 %v1877_v0, %s2899_s0 }
0x243e   :  { %v1880_v4 = vpop.permute.xlu0 %1879 }
0x243f   :  { %v1882_v42 = vadd.f32 %v1880_v4, %v3281_v38 }
0x2441   :  { %2701 = vtanh.f32 %v1882_v42 }
0x244e   :  { %v2702_v43 = vpop.eup %2701 }
0x244f   :  { %1886 = vrot.lane.b32.xlu1 %v2702_v43, %s2900_s4 }
0x24c1   :  { %v1887_v48 = vpop.permute.xlu1 %1886 }
0x24c2   :  { %v1889_v49 = vmul.f32 %v1887_v48, %v1884_v46 }
0x24c4   :  { %v3392_v50 = vadd.f32 %v1892_v19, %v1889_v49 }
0x24c6   :  { %v1899_v51 = vrot.slane %v3392_v50, 2  ;;  %v2003_v2 = vrot.slane %v3392_v50, 6 }
0x24c8   :  { %1900 = vrot.lane.b32.xlu0 %v1899_v51, %s2900_s4 }
0x253a   :  { %v1901_v52 = vpop.permute.xlu0 %1900 }
0x253b   :  { %2579 = vmatmul.mubr.msk.f32.vlgmr.msra.gmra.mxu0 %vm231_vm2, %v1901_v52 }
0x25fb   :  { %v1970_v53 = vpop.f32.mrf.mxu0 }
0x25fc   :  { %v1984_v54 = vadd.f32 %v1970_v53, %v3261_v32  ;;  %v1975_v58 = vrot.slane %v1970_v53, 4 }
0x25fd   :  { %v2580_v55 = vpop.f32.mrf.mxu0 }
0x25fe   :  { %v1986_v56 = vrot.slane %v1984_v54, 4  ;;  %v1977_v59 = vadd.f32 %v1975_v58, %v3281_v38 }
0x2600   :  { %1987 = vrot.lane.b32.xlu1 %v1986_v56, %s2899_s0  ;;  %v2296_v60 = vmul.f32 -1.442695, %v1977_v59 }
0x2602   :  { %2703 = vpow2.f32 %v2296_v60 }
0x260f   :  { %v2704_v61 = vpop.eup %2703 }
0x2610   :  { %v1981_v62 = vadd.f32 1.0, %v2704_v61 }
0x2612   :  { %2705 = vrcp.f32 %v1981_v62 }
0x261f   :  { %v2706_v63 = vpop.eup %2705 }
0x2620   :  { %v1997_v10 = vsub.f32 1.0, %v2706_v63  ;;  %v2005_v11 = vmul.f32 %v2706_v63, %v2003_v2 }
0x2672   :  { %v1988_v1 = vpop.permute.xlu1 %1987 }
0x2673   :  { %v1990_v3 = vmul.f32 %v2706_v63, %v1988_v1 }
0x2675   :  { %1992 = vrot.lane.b32.xlu0 %v1990_v3, %s2899_s0 }
0x26e7   :  { %v1993_v5 = vpop.permute.xlu0 %1992 }
0x26e8   :  { %v1995_v6 = vadd.f32 %v1993_v5, %v3281_v38 }
0x26ea   :  { %2707 = vtanh.f32 %v1995_v6 }
0x26f7   :  { %v2708_v8 = vpop.eup %2707 }
0x26f8   :  { %1999 = vrot.lane.b32.xlu1 %v2708_v8, %s2900_s4 }
0x276a   :  { %v2000_v40 = vpop.permute.xlu1 %1999 }
0x276b   :  { %v2002_v57 = vmul.f32 %v2000_v40, %v1997_v10 }
0x276d   :  { %v2006_v47 = vadd.f32 %v2005_v11, %v2002_v57 }
0x276f   :  { %v2012_v16 = vrot.slane %v2006_v47, 4  ;;  %v2116_v37 = vrot.slane %v2006_v47, 6 }
0x2771   :  { %2013 = vrot.lane.b32.xlu0 %v2012_v16, %s2900_s4 }
0x27e3   :  { %v2014_v24 = vpop.permute.xlu0 %2013 }
0x27e4   :  { %2590 = vmatmul.mubr.msk.f32.vlgmr.msra.gmra.mxu1 %vm231_vm2, %v2014_v24 }
0x28a4   :  { %v2083_v17 = vpop.f32.mrf.mxu1 }
0x28a5   :  { %v2097_v7 = vadd.f32 %v2083_v17, %v3261_v32  ;;  %v2088_v21 = vrot.slane %v2083_v17, 2 }
0x28a6   :  { %v2591_v20 = vpop.f32.mrf.mxu1 }
0x28a7   :  { %v2099_v9 = vrot.slane %v2097_v7, 2  ;;  %v2090_v22 = vadd.f32 %v2088_v21, %v3281_v38 }
0x28a9   :  { %2100 = vrot.lane.b32.xlu1 %v2099_v9, %s2899_s0  ;;  %v2298_v23 = vmul.f32 -1.442695, %v2090_v22 }
0x28ab   :  { %2709 = vpow2.f32 %v2298_v23 }
0x28b8   :  { %v2710_v25 = vpop.eup %2709 }
0x28b9   :  { %v2094_v26 = vadd.f32 1.0, %v2710_v25 }
0x28bb   :  { %2711 = vrcp.f32 %v2094_v26 }
0x28c8   :  { %v2712_v27 = vpop.eup %2711 }
0x28c9   :  { %v2110_v36 = vsub.f32 1.0, %v2712_v27  ;;  %v2118_v39 = vmul.f32 %v2712_v27, %v2116_v37 }
0x291b   :  { %v2101_v28 = vpop.permute.xlu1 %2100 }
0x291c   :  { %v2103_v29 = vmul.f32 %v2712_v27, %v2101_v28 }
0x291e   :  { %2105 = vrot.lane.b32.xlu0 %v2103_v29, %s2899_s0 }
0x2922   :  { %1451 = vrot.lane.b32.xlu0 %v3310_v18, %s2900_s4  ;;  %v2131_v18 = vld [vmem:[#allocation12 + $0x10] sm:$0xff] }
0x2926   :  { %1677 = vrot.lane.b32.xlu0 %v3354_v14, %s2900_s4  ;;  %v2130_v14 = vld [vmem:[#allocation12 + $0x8] sm:$0xff] }
0x292a   :  { %2008 = vrot.lane.b32.xlu0 %v2006_v47, %s2900_s4 }
0x2990   :  { %v2106_v32 = vpop.permute.xlu0 %2105 }
0x2991   :  { %v2108_v30 = vadd.f32 %v2106_v32, %v3281_v38  ;;  %v2132_v38 = vld [vmem:[#allocation12 + $0x18] sm:$0xff] }
0x2992   :  { %2592 = vmatprep.subr.mxu0 %v2132_v38 }
0x2993   :  { %2713 = vtanh.f32 %v2108_v30  ;;  %2593 = vmatpush3.msra.mxu0 %v2132_v38 }
0x2994   :  { %v1452_v31 = vpop.permute.xlu0 %1451  ;;  %2594 = vmatprep.subr.mxu0 %v2131_v18 }
0x2995   :  { %1454 = vst.msk [vmem:[#allocation2] sm:$0xc] %vm453_vm4, %v1452_v31  ;;  %2595 = vmatpush3.msra.mxu0 %v2131_v18 }
0x2996   :  { %2596 = vmatprep.subr.mxu0 %v2130_v14 }
0x2997   :  { %2597 = vmatpush3.msra.mxu0 %v2130_v14 }
0x2998   :  { %v1678_v33 = vpop.permute.xlu0 %1677  ;;  %2598 = vmatprep.subr.mxu0 %v2129_v35 }
0x2999   :  { %1680 = vst.msk [vmem:[#allocation2] sm:$0xc0] %vm681_vm5, %v1678_v33  ;;  %2599 = vmatpush3.msra.mxu0 %v2129_v35 }
0x299c   :  { %v2009_v34 = vpop.permute.xlu0 %2008 }
0x299d   :  { %2011 = vst.msk [vmem:[#allocation2 + $0x8] sm:$0x30] %vm567_vm6, %v2009_v34 }
0x29a0   :  { %v2714_v12 = vpop.eup %2713 }
0x29a1   :  { %2112 = vrot.lane.b32.xlu1 %v2714_v12, %s2900_s4 }
0x29a5   :  { %1564 = vrot.lane.b32.xlu1 %v3332_v45, %s2900_s4 }
0x29a9   :  { %1895 = vrot.lane.b32.xlu1 %v3392_v50, %s2900_s4 }
0x2a13   :  { %v2113_v15 = vpop.permute.xlu1 %2112 }
0x2a14   :  { %v2115_v45 = vmul.f32 %v2113_v15, %v2110_v36 }
0x2a16   :  { %v2119_v13 = vadd.f32 %v2118_v39, %v2115_v45 }
0x2a17   :  { %v1565_v41 = vpop.permute.xlu1 %1564 }
0x2a18   :  { %1567 = vst.msk [vmem:[#allocation2] sm:$0x30] %vm567_vm6, %v1565_v41  ;;  %2121 = vrot.lane.b32.xlu1 %v2119_v13, %s2900_s4 }
0x2a1b   :  { %v1896_v0 = vpop.permute.xlu1 %1895 }
0x2a1c   :  { %1898 = vst.msk [vmem:[#allocation2 + $0x8] sm:$0xc] %vm453_vm4, %v1896_v0 }
0x2a1f   :  { %v2127_v4 = vld [vmem:[#allocation2] sm:$0xff] }
0x2a20   :  { %2600 = vmatprep.mubr.msk.f32.mxu0 %vm231_vm2, %v2127_v4 }
0x2a8a   :  { %v2122_v42 = vpop.permute.xlu1 %2121 }
0x2a8b   :  { %2124 = vst.msk [vmem:[#allocation2 + $0x8] sm:$0xc0] %vm681_vm5, %v2122_v42  ;;  %2126 = vst.msk [vmem:[#allocation15 - $0x4] sm:$0xc0] %vm681_vm5, %v2122_v42 }
0x2a92   :  { %v2128_v43 = vld [vmem:[#allocation2 + $0x8] sm:$0xff] }
0x2a93   :  { %2601 = vmatmul.mubr.msk.f32.vlgmr.msra.gmra.mxu0 %vm231_vm2, %v2128_v43 }
0x2a94   :  { %2846 = shalt.err (!%p2843_p6)
}
0x2a95   :  { %2246 = dma.vmem_to_hbm [thread:$0]  %s2241_s16, 64, %s3459_s13, [#allocation16], %s2892_s22, %s2892_s22, %s2893_s23  }
0x2a96   :  { %v2299_v44 = vld [vmem:[%s3457_s11] ss:$0 sm:$0xff]  ;;  %s2902_s21 = smov [#allocation14]  }
0x2a97   :  { %s2228_s3 = sshll.u32 %s2902_s21, 4  ;;  %s2229_s3 = int_to_ptr.vmem [resolvable:$true] %s2228_s3 }
0x2a98   :  { %s2855_s2 = scalar_lea.vmem %s2229_s3, 256  ;;  %p2860_p8 = scmp.lt.s32.totalorder %s2229_s3, %s2229_s3 }
0x2a99   :  { %p2856_p7 = scmp.ne.s32.totalorder %s2229_s3, %s2855_s2  ;;  %p2861_p9 = scmp.lt.s32.totalorder %s2855_s2, %s2855_s2 }
0x2a9b   :  { %p2862_p10 = por %p2861_p9, %p2860_p8 }
0x2a9d   :  { %p2863_p11 = pnand %p2862_p10, %p2856_p7 }
0x2b53   :  { %v2602_v46 = vpop.f32.mrf.mxu0 }
0x2b54   :  { %v2218_v48 = vadd.f32 %v2602_v46, %v2299_v44 }
0x2b55   :  { %v2212_v49 = vpop.f32.mrf.mxu0 }
0x2b56   :  { %2222 = vst [vmem:[#allocation14 + $0x8] sm:$0xff] %v2218_v48  ;;  %v2213_v19 = vadd.f32 %v2299_v44, %v2212_v49 }
0x2b58   :  { %2221 = vst [vmem:[#allocation14] sm:$0xff] %v2213_v19 }
0x2b59   :  { %2866 = shalt.err (!%p2863_p11)
}
0x2b5a   :  { %2234 = dma.vmem_to_hbm [thread:$0]  %s2229_s3, 256, %s3458_s12, [#allocation5], %s2888_s28, %s2888_s28, %s2889_s29  }
0x2b5b   :  { %2883 = dma.done.wait [#allocation5], 256  }
0x2b5c   :  { %2884 = vsyncadd [#allocation5], 4294967040 }
0x2b5d   :  { %2885 = dma.done.wait [#allocation16], 64  }
0x2b5e   :  { %2886 = vsyncadd [#allocation16], 4294967232 }
0x2b5f   :  { %2253 = vsyncpa [#allocation4], 1 }
0x2b60   :  { %2254 = vsyncpa [#allocation7], 1 }
0x2b61   :  { %2255 = vsyncpa [#allocation10], 1 }
0x2b62   :  { %2256 = vsyncpa [#allocation13], 1 }
0x2b63   :  { %2257 = vsyncpa [#allocation5], 1 }
0x2b64   :  { %2258 = vsyncpa [#allocation16], 1 }

</bundles_post_ra>
